<compile_context>
chip_gen: v7x
topology: tpu7x:2x2x1
jax: 0.10.0
libtpu: 0.0.40
codegen_flags: <defaults>
</compile_context>

<pallas_src>
import jax
import jax.numpy as jnp
import numpy as np
from jax.experimental import pallas as pl
from jax.experimental.pallas import tpu as pltpu


def laplacian_cf_kernel(p_rows_ref,   # (tB, n_items) bf16 : P rows of this batch tile
                        p_cols_ref,   # (B,  tI)      bf16 : P cols of this item tile
                        m_tile_ref,   # (tB, Kub)     bf16 : [Uv|Bv] rows of this batch tile
                        m_t_ref,      # (Kub, B)      bf16 : [Uv|Bv]^T (full, constant)
                        iv_ref,       # (n_items, Ki) bf16 : item eigenvectors (full, constant)
                        iv_t_ref,     # (Ki, tI)      bf16 : Iv^T cols of this item tile
                        wub_ref,      # (1, Kub)      f32  : concat([wu, wb]) raw weights
                        wi_ref,       # (1, Ki)       f32  : item raw weights
                        out_ref,      # (tB, tI)      f32
                        gram_sc,      # VMEM (tB, B)  bf16 : cached merged u+b gram (incl. 1/3)
                        t_sc):        # VMEM (tB, Ki) bf16 : cached (P@Iv)*fi (incl. 1/3)
    j = pl.program_id(1)   # item-column tile (arbitrary, innermost)

    # Heavy per-batch-tile work is independent of j: do it once, cache in scratch.
    @pl.when(j == 0)
    def _():
        # 1/3 average folded into the filter responses (EUP sigmoid + tiny VPU mul)
        fub = jax.nn.sigmoid(wub_ref[...]) * (1.0 / 3.0)     # (1, Kub) f32
        fi = jax.nn.sigmoid(wi_ref[...]) * (1.0 / 3.0)       # (1, Ki)  f32
        # merged user+bipartite gram: (M_tile * f) @ M^T   — plain contraction, no vxpose
        scaled = (m_tile_ref[...] * fub).astype(jnp.bfloat16)          # (tB, Kub) bf16
        gram = jnp.dot(scaled, m_t_ref[...],
                       preferred_element_type=jnp.float32)             # (tB, B) f32 acc
        gram_sc[...] = gram.astype(jnp.bfloat16)
        # item chain stage 1:  t = (P_rows @ Iv) * fi
        t = jnp.dot(p_rows_ref[...], iv_ref[...],
                    preferred_element_type=jnp.float32) * fi           # (tB, Ki) f32 acc
        t_sc[...] = t.astype(jnp.bfloat16)

    # Per item-column tile: two projections (both leading-dim contractions), summed.
    ub_part = jnp.dot(gram_sc[...], p_cols_ref[...],
                      preferred_element_type=jnp.float32)              # (tB, tI)
    item_part = jnp.dot(t_sc[...], iv_t_ref[...],
                        preferred_element_type=jnp.float32)            # (tB, tI)
    out_ref[...] = ub_part + item_part


def laplacian_cf_forward(user_profiles, user_vecs, item_eigenvecs,
                         bipartite_vecs, uw, iw, bw, *, tb=128, ti=None):
    B, n_items = user_profiles.shape
    i_eigen = item_eigenvecs.shape[1]
    if ti is None:
        ti = n_items if n_items <= 512 else 512

    # Merge the user + bipartite spectral chains along the eigen axis.
    m = jnp.concatenate([user_vecs, bipartite_vecs], axis=-1)          # (B, Kub)
    wub = jnp.concatenate([uw, bw], axis=-1)                           # (Kub,)
    k_ub = m.shape[1]
    k_pad = ((k_ub + 127) // 128) * 128
    if k_pad != k_ub:
        # zero-padded columns contribute 0 * sigmoid(0) * 0 = 0 to the gram
        m = jnp.pad(m, ((0, 0), (0, k_pad - k_ub)))
        wub = jnp.pad(wub, (0, k_pad - k_ub))
    wub = wub.reshape(1, -1).astype(jnp.float32)
    wi = iw.reshape(1, -1).astype(jnp.float32)

    # bf16 MXU operands (f32 accumulation in-kernel). P is {0,1} -> exact in bf16.
    p_bf = user_profiles.astype(jnp.bfloat16)                          # (B, n_items)
    m_bf = m.astype(jnp.bfloat16)                                      # (B, k_pad)
    m_t_bf = m_bf.T                                                    # (k_pad, B)
    iv_bf = item_eigenvecs.astype(jnp.bfloat16)                        # (n_items, i_eigen)
    iv_t_bf = iv_bf.T                                                  # (i_eigen, n_items)

    assert B % tb == 0 and n_items % ti == 0, "demo shapes must tile evenly"
    assert k_pad % 128 == 0 and i_eigen % 128 == 0
    nb = B // tb
    nj = n_items // ti

    grid_spec = pltpu.PrefetchScalarGridSpec(
        num_scalar_prefetch=0,
        grid=(nb, nj),
        in_specs=[
            pl.BlockSpec((tb, n_items), lambda i, j: (i, 0)),          # P rows (batch tile)
            pl.BlockSpec((B, ti), lambda i, j: (0, j)),                # P cols (item tile)
            pl.BlockSpec((tb, k_pad), lambda i, j: (i, 0)),            # M rows (batch tile)
            pl.BlockSpec((k_pad, B), lambda i, j: (0, 0),
                         pipeline_mode=pl.Buffered(1)),                # M^T (constant)
            pl.BlockSpec((n_items, i_eigen), lambda i, j: (0, 0),
                         pipeline_mode=pl.Buffered(1)),                # Iv (constant)
            pl.BlockSpec((i_eigen, ti), lambda i, j: (0, j)),          # Iv^T cols (item tile)
            pl.BlockSpec((1, k_pad), lambda i, j: (0, 0),
                         pipeline_mode=pl.Buffered(1)),                # merged u+b weights
            pl.BlockSpec((1, i_eigen), lambda i, j: (0, 0),
                         pipeline_mode=pl.Buffered(1)),                # item weights
        ],
        out_specs=pl.BlockSpec((tb, ti), lambda i, j: (i, j)),
        scratch_shapes=[
            pltpu.VMEM((tb, B), jnp.bfloat16),        # cached merged gram (scaled)
            pltpu.VMEM((tb, i_eigen), jnp.bfloat16),  # cached (P@Iv)*fi
        ],
    )

    flops = 2 * B * (k_pad * B + n_items * i_eigen + B * n_items + i_eigen * n_items)
    bytes_accessed = ((1 + nb) * B * n_items * 2            # P rows + P cols (bf16)
                      + (1 + nb) * B * k_pad * 2            # M tiles + M^T (bf16)
                      + 2 * nb * n_items * i_eigen * 2      # Iv + Iv^T (bf16)
                      + B * n_items * 4)                    # output (f32)
    cost = pl.CostEstimate(flops=flops,
                           transcendentals=nb * (k_pad + i_eigen),
                           bytes_accessed=bytes_accessed)

    return pl.pallas_call(
        laplacian_cf_kernel,
        out_shape=jax.ShapeDtypeStruct((B, n_items), jnp.float32),
        grid_spec=grid_spec,
        cost_estimate=cost,
        compiler_params=pltpu.CompilerParams(
            dimension_semantics=("parallel", "arbitrary"),
            vmem_limit_bytes=32 * 1024 * 1024,   # explicit (v5e default is 16 MiB)
        ),
    )(p_bf, p_bf, m_bf, m_t_bf, iv_bf, iv_t_bf, wub, wi)


def smooth_filter_init(n_eigen):
    # LaplacianFilter(init_type='smooth'): w[i] = exp(-i / (n/4))
    i = np.arange(n_eigen, dtype=np.float32)
    return jnp.asarray(np.exp(-i / (n_eigen / 4.0)), dtype=jnp.float32)


if __name__ == "__main__":
    # Deterministic synthetic problem (small but MXU-friendly: batch >= 2*tb so
    # v7x's two TensorCores can split the parallel batch-tile axis).
    n_users, n_items = 256, 512
    u_eigen, i_eigen, b_eigen = 64, 256, 256
    batch = 256

    key = jax.random.PRNGKey(0)
    k_adj, k_u, k_i, k_b, k_users = jax.random.split(key, 5)

    # Binary interaction matrix (stand-in for the CSR adj_mat).
    adj = (jax.random.uniform(k_adj, (n_users, n_items)) < 0.1).astype(jnp.float32)

    # Synthetic "eigenvector" buffers (deterministic; not an actual eigsh).
    user_eigenvecs = jax.random.normal(k_u, (n_users, u_eigen), jnp.float32) * 0.1
    item_eigenvecs = jax.random.normal(k_i, (n_items, i_eigen), jnp.float32) * 0.1
    bip_eigenvecs = jax.random.normal(k_b, (n_users + n_items, b_eigen), jnp.float32) * 0.1

    # Learnable filter weights, smooth init.
    uw = smooth_filter_init(u_eigen)
    iw = smooth_filter_init(i_eigen)
    bw = smooth_filter_init(b_eigen)

    # Batch of user ids.
    users = jax.random.randint(k_users, (batch,), 0, n_users)

    # Glue (gathers) in plain JAX — mirrors user_profiles construction and
    # eigenvector row indexing of the PyTorch forward.
    user_profiles = (adj[users] > 0).astype(jnp.float32)        # (B, n_items)
    user_vecs = user_eigenvecs[users]                           # (B, u_eigen)
    bipartite_vecs = bip_eigenvecs[users]                       # (B, b_eigen)

    out = laplacian_cf_forward(user_profiles, user_vecs, item_eigenvecs,
                               bipartite_vecs, uw, iw, bw, tb=128, ti=512)
    out = jax.block_until_ready(out)

    # Pure-JAX f32 reference (matches the PyTorch forward); bf16 MXU operands
    # with f32 accumulation -> loosened tolerance.
    uf = jax.nn.sigmoid(uw); itf = jax.nn.sigmoid(iw); bf = jax.nn.sigmoid(bw)
    ref_u = (user_vecs * uf) @ user_vecs.T @ user_profiles
    ref_i = ((user_profiles @ item_eigenvecs) * itf) @ item_eigenvecs.T
    ref_b = (bipartite_vecs * bf) @ bipartite_vecs.T @ user_profiles
    ref = (ref_u + ref_i + ref_b) / 3.0
    np.testing.assert_allclose(np.asarray(out), np.asarray(ref), rtol=2e-2, atol=2e-2)

    print("KERNEL_OK")
</pallas_src>

<mosaic_0001>
module attributes {stable_mosaic.version = 11 : i64} {
  func.func @laplacian_cf_kernel(%arg0: i32, %arg1: i32, %arg2: memref<128x512xbf16, #tpu.memory_space<vmem>>, %arg3: memref<256x512xbf16, #tpu.memory_space<vmem>>, %arg4: memref<128x384xbf16, #tpu.memory_space<vmem>>, %arg5: memref<384x256xbf16, #tpu.memory_space<vmem>>, %arg6: memref<512x256xbf16, #tpu.memory_space<vmem>>, %arg7: memref<256x512xbf16, #tpu.memory_space<vmem>>, %arg8: memref<1x384xf32, #tpu.memory_space<vmem>>, %arg9: memref<1x256xf32, #tpu.memory_space<vmem>>, %arg10: memref<128x512xf32, #tpu.memory_space<vmem>>, %arg11: memref<128x256xbf16, #tpu.memory_space<vmem>>, %arg12: memref<128x256xbf16, #tpu.memory_space<vmem>>) attributes {dimension_semantics = [#tpu.dimension_semantics<parallel>, #tpu.dimension_semantics<arbitrary>], iteration_bounds = array<i64: 2, 1>, scalar_prefetch = 0 : i64, scratch_operands = 2 : i64, tpu.core_type = #tpu.core_type<tc>, window_params = [{transform_indices = @transform_0, window_bounds = array<i64: 128, 512>}, {transform_indices = @transform_1, window_bounds = array<i64: 256, 512>}, {transform_indices = @transform_2, window_bounds = array<i64: 128, 384>}, {pipeline_mode = #tpu.pipeline_mode<synchronous>, transform_indices = @transform_3, window_bounds = array<i64: 384, 256>}, {pipeline_mode = #tpu.pipeline_mode<synchronous>, transform_indices = @transform_4, window_bounds = array<i64: 512, 256>}, {transform_indices = @transform_5, window_bounds = array<i64: 256, 512>}, {pipeline_mode = #tpu.pipeline_mode<synchronous>, transform_indices = @transform_6, window_bounds = array<i64: 1, 384>}, {pipeline_mode = #tpu.pipeline_mode<synchronous>, transform_indices = @transform_7, window_bounds = array<i64: 1, 256>}, {transform_indices = @transform_8, window_bounds = array<i64: 128, 512>}]} {
    %c0_i32 = arith.constant 0 : i32
    %0 = arith.cmpi eq, %arg1, %c0_i32 : i32
    %1 = arith.extui %0 : i1 to i32
    %c0_i32_0 = arith.constant 0 : i32
    %2 = arith.cmpi ne, %1, %c0_i32_0 : i32
    scf.if %2 {
      %c0_11 = arith.constant 0 : index
      %c0_12 = arith.constant 0 : index
      %11 = vector.load %arg8[%c0_11, %c0_12] : memref<1x384xf32, #tpu.memory_space<vmem>>, vector<1x384xf32>
      %12 = arith.negf %11 : vector<1x384xf32>
      %13 = math.exp %12 : vector<1x384xf32>
      %cst_13 = arith.constant 1.000000e+00 : f32
      %14 = vector.broadcast %cst_13 : f32 to vector<1x384xf32>
      %15 = arith.addf %14, %13 : vector<1x384xf32>
      %16 = arith.divf %14, %15 : vector<1x384xf32>
      %cst_14 = arith.constant 0.333333343 : f32
      %17 = vector.broadcast %cst_14 : f32 to vector<1x384xf32>
      %18 = arith.mulf %16, %17 : vector<1x384xf32>
      %c0_15 = arith.constant 0 : index
      %c0_16 = arith.constant 0 : index
      %19 = vector.load %arg9[%c0_15, %c0_16] : memref<1x256xf32, #tpu.memory_space<vmem>>, vector<1x256xf32>
      %20 = arith.negf %19 : vector<1x256xf32>
      %21 = math.exp %20 : vector<1x256xf32>
      %cst_17 = arith.constant 1.000000e+00 : f32
      %22 = vector.broadcast %cst_17 : f32 to vector<1x256xf32>
      %23 = arith.addf %22, %21 : vector<1x256xf32>
      %24 = arith.divf %22, %23 : vector<1x256xf32>
      %cst_18 = arith.constant 0.333333343 : f32
      %25 = vector.broadcast %cst_18 : f32 to vector<1x256xf32>
      %26 = arith.mulf %24, %25 : vector<1x256xf32>
      %c0_19 = arith.constant 0 : index
      %c0_20 = arith.constant 0 : index
      %27 = vector.load %arg4[%c0_19, %c0_20] : memref<128x384xbf16, #tpu.memory_space<vmem>>, vector<128x384xbf16>
      %28 = arith.extf %27 : vector<128x384xbf16> to vector<128x384xf32>
      %29 = vector.broadcast %18 : vector<1x384xf32> to vector<128x384xf32>
      %30 = arith.mulf %28, %29 : vector<128x384xf32>
      %31 = arith.truncf %30 : vector<128x384xf32> to vector<128x384xbf16>
      %c0_21 = arith.constant 0 : index
      %c0_22 = arith.constant 0 : index
      %32 = vector.load %arg5[%c0_21, %c0_22] : memref<384x256xbf16, #tpu.memory_space<vmem>>, vector<384x256xbf16>
      %cst_23 = arith.constant dense<0.000000e+00> : vector<128x256xf32>
      %33 = tpu.matmul %31, %32, %cst_23 {dimension_numbers = #tpu.dot_dimension_numbers<[1], [0], [0], [1], [0, 0, 1, 1], [], []>} : vector<128x384xbf16>, vector<384x256xbf16>, vector<128x256xf32> -> vector<128x256xf32>
      %34 = arith.truncf %33 : vector<128x256xf32> to vector<128x256xbf16>
      %c0_24 = arith.constant 0 : index
      %c0_25 = arith.constant 0 : index
      %35 = vector.load %arg11[%c0_24, %c0_25] : memref<128x256xbf16, #tpu.memory_space<vmem>>, vector<128x256xbf16>
      tpu.vector_store %arg11[%c0_24, %c0_25], %34 {strides = array<i32>} : memref<128x256xbf16, #tpu.memory_space<vmem>>, vector<128x256xbf16>,
      %c0_26 = arith.constant 0 : index
      %c0_27 = arith.constant 0 : index
      %36 = vector.load %arg2[%c0_26, %c0_27] : memref<128x512xbf16, #tpu.memory_space<vmem>>, vector<128x512xbf16>
      %c0_28 = arith.constant 0 : index
      %c0_29 = arith.constant 0 : index
      %37 = vector.load %arg6[%c0_28, %c0_29] : memref<512x256xbf16, #tpu.memory_space<vmem>>, vector<512x256xbf16>
      %cst_30 = arith.constant dense<0.000000e+00> : vector<128x256xf32>
      %38 = tpu.matmul %36, %37, %cst_30 {dimension_numbers = #tpu.dot_dimension_numbers<[1], [0], [0], [1], [0, 0, 1, 1], [], []>} : vector<128x512xbf16>, vector<512x256xbf16>, vector<128x256xf32> -> vector<128x256xf32>
      %39 = vector.broadcast %26 : vector<1x256xf32> to vector<128x256xf32>
      %40 = arith.mulf %38, %39 : vector<128x256xf32>
      %41 = arith.truncf %40 : vector<128x256xf32> to vector<128x256xbf16>
      %c0_31 = arith.constant 0 : index
      %c0_32 = arith.constant 0 : index
      %42 = vector.load %arg12[%c0_31, %c0_32] : memref<128x256xbf16, #tpu.memory_space<vmem>>, vector<128x256xbf16>
      tpu.vector_store %arg12[%c0_31, %c0_32], %41 {strides = array<i32>} : memref<128x256xbf16, #tpu.memory_space<vmem>>, vector<128x256xbf16>,
    } else {
    }
    %c0 = arith.constant 0 : index
    %c0_1 = arith.constant 0 : index
    %3 = vector.load %arg11[%c0, %c0_1] : memref<128x256xbf16, #tpu.memory_space<vmem>>, vector<128x256xbf16>
    %c0_2 = arith.constant 0 : index
    %c0_3 = arith.constant 0 : index
    %4 = vector.load %arg3[%c0_2, %c0_3] : memref<256x512xbf16, #tpu.memory_space<vmem>>, vector<256x512xbf16>
    %cst = arith.constant dense<0.000000e+00> : vector<128x512xf32>
    %5 = tpu.matmul %3, %4, %cst {dimension_numbers = #tpu.dot_dimension_numbers<[1], [0], [0], [1], [0, 0, 1, 1], [], []>} : vector<128x256xbf16>, vector<256x512xbf16>, vector<128x512xf32> -> vector<128x512xf32>
    %c0_4 = arith.constant 0 : index
    %c0_5 = arith.constant 0 : index
    %6 = vector.load %arg12[%c0_4, %c0_5] : memref<128x256xbf16, #tpu.memory_space<vmem>>, vector<128x256xbf16>
    %c0_6 = arith.constant 0 : index
    %c0_7 = arith.constant 0 : index
    %7 = vector.load %arg7[%c0_6, %c0_7] : memref<256x512xbf16, #tpu.memory_space<vmem>>, vector<256x512xbf16>
    %cst_8 = arith.constant dense<0.000000e+00> : vector<128x512xf32>
    %8 = tpu.matmul %6, %7, %cst_8 {dimension_numbers = #tpu.dot_dimension_numbers<[1], [0], [0], [1], [0, 0, 1, 1], [], []>} : vector<128x256xbf16>, vector<256x512xbf16>, vector<128x512xf32> -> vector<128x512xf32>
    %9 = arith.addf %5, %8 : vector<128x512xf32>
    %c0_9 = arith.constant 0 : index
    %c0_10 = arith.constant 0 : index
    %10 = vector.load %arg10[%c0_9, %c0_10] : memref<128x512xf32, #tpu.memory_space<vmem>>, vector<128x512xf32>
    tpu.vector_store %arg10[%c0_9, %c0_10], %9 {strides = array<i32>} : memref<128x512xf32, #tpu.memory_space<vmem>>, vector<128x512xf32>,
    return
  }
  func.func @transform_0(%arg0: i32, %arg1: i32) -> (i32, i32) {
    %c0_i32 = arith.constant 0 : i32
    %c0_i32_0 = arith.constant 0 : i32
    return %arg0, %c0_i32 : i32, i32
  }
  func.func @transform_1(%arg0: i32, %arg1: i32) -> (i32, i32) {
    %c0_i32 = arith.constant 0 : i32
    %c0_i32_0 = arith.constant 0 : i32
    return %c0_i32, %arg1 : i32, i32
  }
  func.func @transform_2(%arg0: i32, %arg1: i32) -> (i32, i32) {
    %c0_i32 = arith.constant 0 : i32
    %c0_i32_0 = arith.constant 0 : i32
    return %arg0, %c0_i32 : i32, i32
  }
  func.func @transform_3(%arg0: i32, %arg1: i32) -> (i32, i32) {
    %c0_i32 = arith.constant 0 : i32
    %c0_i32_0 = arith.constant 0 : i32
    %c0_i32_1 = arith.constant 0 : i32
    return %c0_i32, %c0_i32_0 : i32, i32
  }
  func.func @transform_4(%arg0: i32, %arg1: i32) -> (i32, i32) {
    %c0_i32 = arith.constant 0 : i32
    %c0_i32_0 = arith.constant 0 : i32
    %c0_i32_1 = arith.constant 0 : i32
    return %c0_i32, %c0_i32_0 : i32, i32
  }
  func.func @transform_5(%arg0: i32, %arg1: i32) -> (i32, i32) {
    %c0_i32 = arith.constant 0 : i32
    %c0_i32_0 = arith.constant 0 : i32
    return %c0_i32, %arg1 : i32, i32
  }
  func.func @transform_6(%arg0: i32, %arg1: i32) -> (i32, i32) {
    %c0_i32 = arith.constant 0 : i32
    %c0_i32_0 = arith.constant 0 : i32
    %c0_i32_1 = arith.constant 0 : i32
    return %c0_i32, %c0_i32_0 : i32, i32
  }
  func.func @transform_7(%arg0: i32, %arg1: i32) -> (i32, i32) {
    %c0_i32 = arith.constant 0 : i32
    %c0_i32_0 = arith.constant 0 : i32
    %c0_i32_1 = arith.constant 0 : i32
    return %c0_i32, %c0_i32_0 : i32, i32
  }
  func.func @transform_8(%arg0: i32, %arg1: i32) -> (i32, i32) {
    %c0_i32 = arith.constant 0 : i32
    return %arg0, %arg1 : i32, i32
  }
}

</mosaic_0001>

<bundles_post_ra>
// kernel: tpu_custom_call.1
= control target key start
LH: loop header
LB: loop body
LE: loop exit
PB: predicated region body
PF: predicated region fallthrough
CT: control target
= control target key end

     0   :  { %s5491_s0 = inlined_call_operand.hbm [shape: bf16[256,512], index: 0, kind: input, shape index: {}]   ;;  %s5492_s1 = inlined_call_operand.hbm [shape: bf16[256,512], index: 1, kind: input, shape index: {}]   ;;  %s5493_s2 = inlined_call_operand.hbm [shape: bf16[256,384], index: 2, kind: input, shape index: {}]   ;;  %s5494_s3 = inlined_call_operand.hbm [shape: bf16[384,256], index: 3, kind: input, shape index: {}]   ;;  %s5495_s4 = inlined_call_operand.hbm [shape: bf16[512,256], index: 4, kind: input, shape index: {}]   ;;  %s5496_s5 = inlined_call_operand.hbm [shape: bf16[256,512], index: 5, kind: input, shape index: {}]   ;;  %s5497_s6 = inlined_call_operand.vmem [shape: f32[1,384], index: 6, kind: input, shape index: {}]   ;;  %s5498_s7 = inlined_call_operand.vmem [shape: f32[1,256], index: 7, kind: input, shape index: {}]   ;;  %s5499_s8 = inlined_call_operand.hbm [shape: f32[256,512], index: 8, kind: output, shape index: {}]  }
   0x1   :  { %5524 = sst [smem:[#allocation29_spill]] %s5491_s0 }
   0x2   :  { %5525 = sst [smem:[#allocation30_spill]] %s5492_s1 }
   0x3   :  { %5526 = sst [smem:[#allocation31_spill]] %s5495_s4 }
   0x4   :  { %5527 = sst [smem:[#allocation32_spill]] %s5499_s8 }
   0x5   :  { %13 = vsyncpa [#allocation5], 0 }
   0x6   :  { %15 = vsyncpa [#allocation5 + $0x1], 0 }
   0x7   :  { %16 = vsyncpa [#allocation8], 0 }
   0x8   :  { %17 = vsyncpa [#allocation12], 0 }
   0x9   :  { %18 = vsyncpa [#allocation6], 0 }
   0xa   :  { %20 = vsyncpa [#allocation6 + $0x1], 0  ;;  %s4851_s27 = smov 0   ;;  %s4853_s28 = smov 0  }
   0xb   :  { %s4855_s29 = smov 0   ;;  %s4857_s30 = smov 0  }
   0xc   :  { %s4859_s9 = smov 0   ;;  %s4861_s10 = smov 0  }
   0xd LB: > { %5528 = sst [smem:[#allocation21_spill]] %s4768_s27  ;;  %s4882_s11 = sadd.s32 4294967295, %s4788_s10   ;;  %s4788_s10 = sphi %s4861_s10, %s26_s10   ;;  %s4784_s9 = sphi %s4859_s9, %s5578_s9   ;;  %s4780_s30 = sphi %s4857_s30, %s5577_s30   ;;  %s4776_s29 = sphi %s4855_s29, %s5573_s29   ;;  %s4772_s28 = sphi %s4853_s28, %s5576_s28   ;;  %s4768_s27 = sphi %s4851_s27, %s5575_s27  }
   0xe   : > { %5529 = sst [smem:[#allocation22_spill]] %s4776_s29  ;;  %s3549_s12 = sadd.s32 4294967294, %s4788_s10  }
   0xf   : > { %5530 = sst [smem:[#allocation23_spill]] %s4780_s30  ;;  %p58_p0 = scmp.ne.s32.totalorder %s4772_s28, %s4768_s27 }
  0x10   : > { %5531 = sst [smem:[#allocation24_spill]] %s4788_s10  ;;  %p5500_p1 = scmp.eq.s32.totalorder %s4882_s11, 0 }
  0x11   : > { %p252_p3 = scmp.eq.s32.totalorder %s3549_s12, 1  ;;  %p3550_p5 = scmp.ge.s32.totalorder %s4788_s10, 1 }
  0x12   : > { %p4891_p4 = por %p5500_p1, %p58_p0  ;;  %p259_p7 = scmp.lt.s32.totalorder %s4788_s10, 3 }
  0x13   : > { %p4896_p6 = por %p252_p3, %p58_p0  ;;  %s4790_s16 = smov [#allocation7]  }
  0x14   : > { %s5532_s13 = scalar_select %p4891_p4, 1, 0 }
  0x15   : > { %s5533_s14 = scalar_select %p4896_p6, 1, 0 }
  0x16   : > { %p4901_p8 = pnand %p3550_p5, %p259_p7  ;;  %s274_s17 = sshll.u32 %s4790_s16, 4  ;;  %s275_s17 = int_to_ptr.vmem [resolvable:$true] %s274_s17 }
  0x17   : > { %5534 = sst [smem:[#allocation25_spill]] %s5533_s14  ;;  %s4791_s19 = smov [#allocation11]  }
  0x18   : > { %s5535_s15 = scalar_select %p4901_p8, 1, 0 }
  0x19   : > { %p4007_p9 = pneg %p4901_p8  ;;  %s300_s20 = sshll.u32 %s4791_s19, 4  ;;  %s301_s20 = int_to_ptr.vmem [resolvable:$true] %s300_s20 }
  0x1a   : > { %s5537_s1 = sld [smem:[#allocation30_spill]] }
  0x1b   : > { %p4910_p11 = pnand %p4007_p9, %p5500_p1 }
  0x1d   : > { %s5536_s18 = scalar_select %p4910_p11, 1, 0 }
  0x1e   : > { %p4922_p13 = pneg %p4910_p11 }
  0x20   : > { %s4518_s23 = scalar_lea.hbm %s5537_s1, 8192 }
  0x21   : > { %p4519_p12 = scmp.ne.s32.totalorder %s5537_s1, %s4518_s23  ;;  %p4525_p5 = scmp.lt.u32.totalorder %s4518_s23, %s5537_s1 }
  0x23   : > { %p4521_p0 = pnand %p4922_p13, %p4519_p12 }
  0x25   : > { %p4522_p3 = pneg %p4521_p0 }
  0x27   : > { %p4527_p7 = pnand %p4525_p5, %p4522_p3 }
  0x29   : > { %4530 = shalt.err (!%p4527_p7)
}
  0x2a   : > { %s4531_s19 = scalar_lea.vmem %s275_s17, 8192  ;;  %p4539_p2 = scmp.lt.s32.totalorder %s275_s17, %s275_s17 }
  0x2b   : > { %p4532_p9 = scmp.ne.s32.totalorder %s275_s17, %s4531_s19  ;;  %p4540_p6 = scmp.lt.s32.totalorder %s4531_s19, %s4531_s19 }
  0x2d   : > { %p4534_p10 = pnand %p4532_p9, %p4922_p13  ;;  %p4541_p4 = por %p4540_p6, %p4539_p2 }
  0x2f   : > { %p4535_p1 = pneg %p4534_p10 }
  0x31   : > { %p4542_p8 = pnand %p4541_p4, %p4535_p1 }
  0x33   : > { %4545 = shalt.err (!%p4542_p8)
}
  0x34   : > { %s5508_s21 = smov 256   ;;  %s5510_s22 = smov 16  }
  0x35   : > { %4010 = dma.hbm_to_vmem [thread:$0]  (!%p4910_p11), %s5537_s1, 8192, %s275_s17, [#allocation8], %s5508_s21, %s5508_s21, %s5510_s22  }
  0x36   : > { %s5539_s4 = sld [smem:[#allocation31_spill]] }
  0x3c   : > { %s4546_s16 = scalar_lea.hbm %s5539_s4, 8192 }
  0x3d   : > { %p4547_p1 = scmp.ne.s32.totalorder %s5539_s4, %s4546_s16  ;;  %p4553_p6 = scmp.lt.u32.totalorder %s4546_s16, %s5539_s4 }
  0x3f   : > { %p4549_p2 = pnand %p4547_p1, %p4922_p13 }
  0x41   : > { %p4550_p4 = pneg %p4549_p2 }
  0x43   : > { %p4555_p8 = pnand %p4553_p6, %p4550_p4 }
  0x45   : > { %4558 = shalt.err (!%p4555_p8)
}
  0x46   : > { %s4559_s23 = scalar_lea.vmem %s301_s20, 8192  ;;  %p4567_p3 = scmp.lt.s32.totalorder %s301_s20, %s301_s20 }
  0x47   : > { %p4560_p10 = scmp.ne.s32.totalorder %s301_s20, %s4559_s23  ;;  %p4568_p5 = scmp.lt.s32.totalorder %s4559_s23, %s4559_s23 }
  0x49   : > { %p4562_p12 = pnand %p4560_p10, %p4922_p13  ;;  %p4569_p7 = por %p4568_p5, %p4567_p3 }
  0x4b   : > { %p4563_p0 = pneg %p4562_p12 }
  0x4d   : > { %p4570_p9 = pnand %p4569_p7, %p4563_p0 }
  0x4f   : > { %4573 = shalt.err (!%p4570_p9)
}
  0x50   : > { %s5506_s14 = smov 128   ;;  %s5507_s8 = smov 8  }
  0x51   : > { %4016 = dma.hbm_to_vmem [thread:$0]  (!%p4910_p11), %s5539_s4, 8192, %s301_s20, [#allocation12], %s5506_s14, %s5506_s14, %s5507_s8  }
  0x52   : > { %s38_s24 = sadd.s32 1, %s4784_s9  ;;  %s45_s25 = sadd.s32 1, %s4776_s29 }
  0x53   : > { %p40_p1 = scmp.ge.s32.totalorder %s38_s24, 2  ;;  %p52_p2 = scmp.ne.s32.totalorder %s4776_s29, %s4772_s28 }
  0x54   : > { %p53_p4 = scmp.eq.s32.totalorder %s4788_s10, 0  ;;  %p4035_p6 = scmp.lt.s32.totalorder %s4788_s10, 2 }
  0x55   : > { %s5580_s24 = smov (%p40_p1, %s38_s24), 0  ;;  %p5541_p10 = scmp.eq.s32.totalorder %s4882_s11, 1 }
  0x56   : > { %5540 = sst [smem:[#allocation26_spill]] %s5580_s24  ;;  %p54_p8 = por %p53_p4, %p52_p2 }
  0x57   : > { %p4972_p12 = por %p5541_p10, %p52_p2  ;;  %s42_s16 = ssub.s32 %s4784_s9, %s5580_s24 }
  0x58   : > { %s336_s19 = sand.u32 1, %s4788_s10   ;;  %p43_p0 = scmp.eq.s32.totalorder %s42_s16, 0 }
  0x59   : > { %s5542_s12 = scalar_select %p4972_p12, 1, 0 }
  0x5a   : > { %s338_s23 = sand.u32 1, %s4776_s29   ;;  %s3851_s20 = sshll.u32 %s4784_s9, 12 }
  0x5b   : > { %5543 = sst [smem:[#allocation27_spill]] %s5542_s12  ;;  %s3556_s17 = sshll.u32 %s338_s23, 8 }
  0x5c   : > { %s4982_s27 = scalar_select %p43_p0, %s4776_s29, %s45_s25  }
  0x5d   : > { %s5545_s0 = sld [smem:[#allocation29_spill]]  ;;  %p4989_p3 = pnand %p4035_p6, %p54_p8 }
  0x5e   : > { %5544 = sst [smem:[#allocation28_spill]] %s4982_s27  ;;  %s340_s16 = scalar_lea.vmem [#allocation4], %s3556_s17 }
  0x5f   : > { %s5546_s22 = scalar_select %p4989_p3, 1, 0 }
  0x60   : > { %s348_s1 = sshll.u32 %s340_s16, 4  ;;  %s4993_s25 = smul.u32 192, %s338_s23  ;;  %s4995_s1 = int_to_ptr.vmem [resolvable:$true] %s348_s1 }
  0x61   : > { %s4997_s4 = scalar_lea.sflag [#allocation5], %s336_s19  ;;  %p5521_p7 = pneg %p4989_p3 }
  0x63   : > { %s4987_s21 = scalar_lea.hbm %s5545_s0, %s3851_s20  ;;  %s4579_s24 = scalar_lea.hbm %s5545_s0, 8192 }
  0x64   : > { %s4574_s14 = scalar_lea.hbm %s4987_s21, 4096  ;;  %p4580_p2 = scmp.lt.u32.totalorder %s4987_s21, %s5545_s0 }
  0x65   : > { %p4575_p5 = scmp.ne.s32.totalorder %s4987_s21, %s4574_s14  ;;  %p4581_p4 = scmp.lt.u32.totalorder %s4579_s24, %s4574_s14 }
  0x66   : > { %p4583_p8 = scmp.lt.u32.totalorder %s4574_s14, %s4987_s21 }
  0x67   : > { %p4577_p9 = pnand %p5521_p7, %p4575_p5  ;;  %p4582_p6 = por %p4581_p4, %p4580_p2 }
  0x69   : > { %p4578_p1 = pneg %p4577_p9  ;;  %p4584_p10 = por %p4583_p8, %p4582_p6 }
  0x6b   : > { %p4585_p0 = pnand %p4584_p10, %p4578_p1 }
  0x6d   : > { %4588 = shalt.err (!%p4585_p0)
}
  0x6e   : > { %s4589_s19 = scalar_lea.vmem %s4995_s1, 4096  ;;  %s4796_s23 = smov [#allocation4]  }
  0x6f   : > { %p4590_p5 = scmp.ne.s32.totalorder %s4995_s1, %s4589_s19  ;;  %s4594_s8 = sshll.u32 %s4796_s23, 4  ;;  %s4595_s8 = int_to_ptr.vmem [resolvable:$false] %s4594_s8 }
  0x70   : > { %s4596_s20 = scalar_lea.vmem %s4595_s8, 8192  ;;  %p4597_p11 = scmp.lt.s32.totalorder %s4995_s1, %s4595_s8 }
  0x71   : > { %p4592_p9 = pnand %p4590_p5, %p5521_p7  ;;  %p4598_p2 = scmp.lt.s32.totalorder %s4596_s20, %s4589_s19 }
  0x73   : > { %p4593_p12 = pneg %p4592_p9  ;;  %p4599_p4 = por %p4598_p2, %p4597_p11 }
  0x75   : > { %p4600_p6 = pnand %p4599_p4, %p4593_p12 }
  0x77   : > { %4603 = shalt.err (!%p4600_p6)
}
  0x78   : > { %s5547_s24 = smov 16   ;;  %s5548_s14 = smov 256  }
  0x79   : > { %4023 = dma.hbm_to_vmem [thread:$0]  (!%p4989_p3), %s4987_s21, 4096, %s4995_s1, %s4997_s4, %s5548_s14, %s5548_s14, %s5547_s24  }
  0x7a   : > { %s4797_s17 = smov [#allocation10]   ;;  %s4798_s23 = smov [#allocation13]  }
  0x7b   : > { %s287_s16 = sshll.u32 %s4797_s17, 4  ;;  %s316_s0 = sshll.u32 %s4798_s23, 4  ;;  %s288_s16 = int_to_ptr.vmem [resolvable:$true] %s287_s16  ;;  %s317_s0 = int_to_ptr.vmem [resolvable:$true] %s316_s0 }
  0x7c   : > { %s4604_s20 = scalar_lea.hbm %s5494_s3, 6144 }
  0x7d   : > { %p4605_p11 = scmp.ne.s32.totalorder %s5494_s3, %s4604_s20  ;;  %p4611_p8 = scmp.lt.u32.totalorder %s4604_s20, %s5494_s3 }
  0x7f   : > { %p4607_p12 = pnand %p4605_p11, %p4922_p13 }
  0x81   : > { %p4608_p1 = pneg %p4607_p12 }
  0x83   : > { %p4613_p10 = pnand %p4611_p8, %p4608_p1 }
  0x85   : > { %4616 = shalt.err (!%p4613_p10)
}
  0x86   : > { %s4617_s1 = scalar_lea.vmem %s288_s16, 6144  ;;  %p4625_p2 = scmp.lt.s32.totalorder %s288_s16, %s288_s16 }
  0x87   : > { %p4618_p0 = scmp.ne.s32.totalorder %s288_s16, %s4617_s1  ;;  %p4626_p4 = scmp.lt.s32.totalorder %s4617_s1, %s4617_s1 }
  0x89   : > { %p4620_p5 = pnand %p4618_p0, %p4922_p13  ;;  %p4627_p6 = por %p4626_p4, %p4625_p2 }
  0x8b   : > { %p4621_p9 = pneg %p4620_p5 }
  0x8d   : > { %p4628_p7 = pnand %p4627_p6, %p4621_p9 }
  0x8f   : > { %4631 = shalt.err (!%p4628_p7)
}
  0x90   : > { %p5549_p11 = scmp.ne.s32.totalorder %s5536_s18, 0  ;;  %s5550_s29 = smov 8  }
  0x91   : > { %s5551_s21 = smov 128   ;;  %s3983_s27 = smul.u32 3072, %s4784_s9 }
  0x92   : > { %4013 = dma.hbm_to_vmem [thread:$0]  (!%p5549_p11), %s5494_s3, 6144, %s288_s16, [#allocation8], %s5551_s21, %s5551_s21, %s5550_s29  }
  0x93   : > { %s4632_s8 = scalar_lea.hbm %s5496_s5, 8192 }
  0x94   : > { %p4633_p7 = scmp.ne.s32.totalorder %s5496_s5, %s4632_s8  ;;  %p4639_p8 = scmp.lt.u32.totalorder %s4632_s8, %s5496_s5 }
  0x96   : > { %p4635_p12 = pnand %p4633_p7, %p4922_p13 }
  0x98   : > { %p4636_p1 = pneg %p4635_p12 }
  0x9a   : > { %p4641_p10 = pnand %p4639_p8, %p4636_p1 }
  0x9c   : > { %4644 = shalt.err (!%p4641_p10)
}
  0x9d   : > { %s4645_s16 = scalar_lea.vmem %s317_s0, 8192  ;;  %p4653_p2 = scmp.lt.s32.totalorder %s317_s0, %s317_s0 }
  0x9e   : > { %p4646_p0 = scmp.ne.s32.totalorder %s317_s0, %s4645_s16  ;;  %p4654_p4 = scmp.lt.s32.totalorder %s4645_s16, %s4645_s16 }
  0xa0   : > { %p4648_p5 = pnand %p4646_p0, %p4922_p13  ;;  %p4655_p6 = por %p4654_p4, %p4653_p2 }
  0xa2   : > { %p4649_p9 = pneg %p4648_p5 }
  0xa4   : > { %p4656_p3 = pnand %p4655_p6, %p4649_p9 }
  0xa6   : > { %4659 = shalt.err (!%p4656_p3)
}
  0xa7   : > { %4019 = dma.hbm_to_vmem [thread:$0]  (!%p5549_p11), %s5496_s5, 8192, %s317_s0, [#allocation12], %s5548_s14, %s5548_s14, %s5547_s24  }
  0xa8   : > { %s5074_s10 = scalar_lea.hbm %s5493_s2, %s3983_s27  ;;  %s362_s12 = scalar_lea.vmem [#allocation9], %s4993_s25 }
  0xa9   : > { %s370_s18 = sshll.u32 %s362_s12, 4  ;;  %s4660_s17 = scalar_lea.hbm %s5074_s10, 3072  ;;  %s5077_s18 = int_to_ptr.vmem [resolvable:$true] %s370_s18 }
  0xaa   : > { %p4661_p13 = scmp.ne.s32.totalorder %s5074_s10, %s4660_s17  ;;  %p5552_p3 = scmp.ne.s32.totalorder %s5546_s22, 0 }
  0xab   : > { %s4665_s14 = scalar_lea.hbm %s5493_s2, 6144  ;;  %p4666_p11 = scmp.lt.u32.totalorder %s5074_s10, %s5493_s2 }
  0xac   : > { %p5553_p7 = pneg %p5552_p3  ;;  %p4667_p8 = scmp.lt.u32.totalorder %s4665_s14, %s4660_s17 }
  0xad   : > { %p4669_p0 = scmp.lt.u32.totalorder %s4660_s17, %s5074_s10 }
  0xae   : > { %p4663_p12 = pnand %p4661_p13, %p5553_p7  ;;  %p4668_p10 = por %p4667_p8, %p4666_p11 }
  0xb0   : > { %p4664_p1 = pneg %p4663_p12  ;;  %p4670_p5 = por %p4669_p0, %p4668_p10 }
  0xb2   : > { %p4671_p9 = pnand %p4670_p5, %p4664_p1 }
  0xb4   : > { %4674 = shalt.err (!%p4671_p9)
}
  0xb5   : > { %s4675_s25 = scalar_lea.vmem %s5077_s18, 3072  ;;  %p5554_p4 = pmov %p5553_p7 }
  0xb6   : > { %p4676_p2 = scmp.ne.s32.totalorder %s5077_s18, %s4675_s25  ;;  %s4799_s8 = smov [#allocation9]  }
  0xb7   : > { %s4680_s19 = sshll.u32 %s4799_s8, 4  ;;  %s4681_s19 = int_to_ptr.vmem [resolvable:$false] %s4680_s19 }
  0xb8   : > { %p4678_p6 = pnand %p4676_p2, %p5554_p4  ;;  %s4682_s20 = scalar_lea.vmem %s4681_s19, 6144 }
  0xb9   : > { %p4683_p7 = scmp.lt.s32.totalorder %s5077_s18, %s4681_s19  ;;  %p4684_p12 = scmp.lt.s32.totalorder %s4682_s20, %s4675_s25 }
  0xba   : > { %p4679_p13 = pneg %p4678_p6 }
  0xbb   : > { %p4685_p11 = por %p4684_p12, %p4683_p7 }
  0xbd   : > { %p4686_p8 = pnand %p4685_p11, %p4679_p13 }
  0xbf   : > { %4689 = shalt.err (!%p4686_p8)
}
  0xc0   : > { %s4800_s1 = smov 192   ;;  %s4801_s16 = smov 12  }
  0xc1   : > { %4026 = dma.hbm_to_vmem [thread:$0]  (!%p5552_p3), %s5074_s10, 3072, %s5077_s18, %s4997_s4, %s4800_s1, %s4800_s1, %s4801_s16  }
  0xc2   : > { %p5555_p1 = scmp.ne.s32.totalorder %s5535_s15, 0 }
  0xc3   : > { %s384_s30 = sand.u32 (!%p5555_p1), 1, %s4882_s11   ;;  %s5107_s29 = sand.u32 (!%p5555_p1), 1, %s4772_s28  }
  0xc4   : > { %382 = sbr.rel (%p5555_p1) target bundleno = 918 (0x396), region = 52  ;;  %s3564_s21 = sshll.u32 (!%p5555_p1), %s5107_s29, 8 }
  0xc5   : > { %s385_s26 = scalar_lea.sflag (!%p5555_p1), [#allocation5], %s384_s30  ;;  %s5110_s12 = scalar_lea.vmem (!%p5555_p1), [#allocation4], %s3564_s21 }
  0xc6   : > { %p5556_p10 = scmp.ne.s32.totalorder (!%p5555_p1), %s5532_s13, 0 }
  0xcb   : > { %4743 = dma.done.wait (%p5556_p10), %s385_s26, 4096  }
  0xcc   : > { %4745 = vsyncadd (%p5556_p10), %s385_s26, 4294963200  ;;  %p5557_p3 = scmp.eq.s32.totalorder %s4882_s11, 0 }
  0xce   : > { %4747 = dma.done.wait (%p5557_p3), [#allocation8], 8192   ;;  %p5558_p0 = pmov %p5557_p3 }
  0xcf   : > { %s3984_s4 = smul.u32 192, %s5107_s29 }
  0xd0   : > { %4749 = vsyncadd (%p5558_p0), [#allocation8], 4294959104 }
  0xd1   : > { %s5121_s15 = scalar_lea.vmem [#allocation9], %s3984_s4 }
  0xd2   : > { %4751 = dma.done.wait (%p5556_p10), %s385_s26, 3072  }
  0xd3   : > { %4753 = vsyncadd (%p5556_p10), %s385_s26, 4294964224  ;;  %p5559_p5 = pmov %p5558_p0 }
  0xd4   : > { %p5560_p9 = pmov %p5558_p0 }
  0xd5   : > { %4755 = dma.done.wait (%p5559_p5), [#allocation8], 6144  }
  0xd6   : > { %4757 = vsyncadd (%p5560_p9), [#allocation8], 4294961152  ;;  %p5561_p2 = pmov %p5558_p0 }
  0xd7   : > { %p5562_p4 = pmov %p5558_p0 }
  0xd8   : > { %4759 = dma.done.wait (%p5561_p2), [#allocation12], 16384  }
  0xd9   : > { %4761 = vsyncadd (%p5562_p4), [#allocation12], 4294950912  ;;  %v4102_v0 = vld [vmem:[#allocation10 + $0x4] ss:$8 sps:$4 sm:$0xff]   ;;  %v4106_v2 = vld [vmem:[#allocation10] ss:$8 sps:$4 sm:$0xff]  }
  0xda   : > { %v4104_v1 = vld [vmem:[#allocation11 + $0x4] ss:$8 sps:$4 sm:$0xff]   ;;  %934 = vmatprep.subr.bf16.mxu0 %v4102_v0  ;;  %v4107_v3 = vld [vmem:[#allocation11] ss:$8 sps:$4 sm:$0xff]   ;;  %v4108_v4 = vld [vmem:[#allocation10 + $0x14] ss:$8 sps:$4 sm:$0xff]  }
  0xdb   : > { %1768 = vmatprep.subr.bf16.mxu1 %v4104_v1  ;;  %935 = vmatpush1.bf16.msra.mxu0 %v4106_v2  ;;  %v4110_v5 = vld [vmem:[#allocation11 + $0x14] ss:$8 sps:$4 sm:$0xff]   ;;  %v4112_v6 = vld [vmem:[#allocation10 + $0x10] ss:$8 sps:$4 sm:$0xff]   ;;  %v4114_v8 = vld [vmem:[#allocation10 + $0x24] ss:$8 sps:$4 sm:$0xff]  }
  0xdc   : > { %1769 = vmatpush1.bf16.msra.mxu1 %v4107_v3  ;;  %936 = vmatprep.subr.bf16.mxu0 %v4108_v4  ;;  %v4113_v7 = vld [vmem:[#allocation11 + $0x10] ss:$8 sps:$4 sm:$0xff]   ;;  %v4116_v9 = vld [vmem:[#allocation11 + $0x24] ss:$8 sps:$4 sm:$0xff]   ;;  %v4118_v10 = vld [vmem:[#allocation10 + $0x20] ss:$8 sps:$4 sm:$0xff]   ;;  %v559_v4 = vlaneseq }
  0xdd   : > { %1770 = vmatprep.subr.bf16.mxu1 %v4110_v5  ;;  %v4119_v11 = vld [vmem:[#allocation11 + $0x20] ss:$8 sps:$4 sm:$0xff]   ;;  %v4120_v12 = vld [vmem:[#allocation10 + $0x34] ss:$8 sps:$4 sm:$0xff]   ;;  %v4124_v14 = vld [vmem:[#allocation10 + $0x30] ss:$8 sps:$4 sm:$0xff]  }
  0xde   : > { %v4122_v13 = vld [vmem:[#allocation11 + $0x34] ss:$8 sps:$4 sm:$0xff]   ;;  %v4125_v15 = vld [vmem:[#allocation11 + $0x30] ss:$8 sps:$4 sm:$0xff]   ;;  %v4126_v16 = vld [vmem:[#allocation10 + $0x44] ss:$8 sps:$4 sm:$0xff]  }
  0xdf   : > { %937 = vmatpush1.bf16.msra.mxu0 %v4112_v6  ;;  %v4128_v17 = vld [vmem:[#allocation11 + $0x44] ss:$8 sps:$4 sm:$0xff]   ;;  %v4130_v18 = vld [vmem:[#allocation10 + $0x40] ss:$8 sps:$4 sm:$0xff]   ;;  %v4132_v20 = vld [vmem:[#allocation10 + $0x54] ss:$8 sps:$4 sm:$0xff]  }
  0xe0   : > { %1771 = vmatpush1.bf16.msra.mxu1 %v4113_v7  ;;  %938 = vmatprep.subr.bf16.mxu0 %v4114_v8  ;;  %v4131_v19 = vld [vmem:[#allocation11 + $0x40] ss:$8 sps:$4 sm:$0xff]   ;;  %v4134_v21 = vld [vmem:[#allocation11 + $0x54] ss:$8 sps:$4 sm:$0xff]   ;;  %v4136_v22 = vld [vmem:[#allocation10 + $0x50] ss:$8 sps:$4 sm:$0xff]  }
  0xe1   : > { %1772 = vmatprep.subr.bf16.mxu1 %v4116_v9  ;;  %v4137_v23 = vld [vmem:[#allocation11 + $0x50] ss:$8 sps:$4 sm:$0xff]   ;;  %v4138_v24 = vld [vmem:[#allocation10 + $0x64] ss:$8 sps:$4 sm:$0xff]   ;;  %v4142_v26 = vld [vmem:[#allocation10 + $0x60] ss:$8 sps:$4 sm:$0xff]  }
  0xe2   : > { %v4140_v25 = vld [vmem:[#allocation11 + $0x64] ss:$8 sps:$4 sm:$0xff]   ;;  %v4143_v27 = vld [vmem:[#allocation11 + $0x60] ss:$8 sps:$4 sm:$0xff]   ;;  %v4144_v28 = vld [vmem:[#allocation10 + $0x74] ss:$8 sps:$4 sm:$0xff]  }
  0xe3   : > { %939 = vmatpush1.bf16.msra.mxu0 %v4118_v10  ;;  %v4146_v29 = vld [vmem:[#allocation11 + $0x74] ss:$8 sps:$4 sm:$0xff]   ;;  %v4148_v30 = vld [vmem:[#allocation10 + $0x70] ss:$8 sps:$4 sm:$0xff]   ;;  %v4150_v32 = vld [vmem:[#allocation10 + $0x84] ss:$8 sps:$4 sm:$0xff]  }
  0xe4   : > { %1773 = vmatpush1.bf16.msra.mxu1 %v4119_v11  ;;  %940 = vmatprep.subr.bf16.mxu0 %v4120_v12  ;;  %v4149_v31 = vld [vmem:[#allocation11 + $0x70] ss:$8 sps:$4 sm:$0xff]   ;;  %v4152_v33 = vld [vmem:[#allocation11 + $0x84] ss:$8 sps:$4 sm:$0xff]   ;;  %v4154_v34 = vld [vmem:[#allocation10 + $0x80] ss:$8 sps:$4 sm:$0xff]  }
  0xe5   : > { %1774 = vmatprep.subr.bf16.mxu1 %v4122_v13  ;;  %v4155_v35 = vld [vmem:[#allocation11 + $0x80] ss:$8 sps:$4 sm:$0xff]   ;;  %v4156_v36 = vld [vmem:[#allocation10 + $0x94] ss:$8 sps:$4 sm:$0xff]   ;;  %v4160_v38 = vld [vmem:[#allocation10 + $0x90] ss:$8 sps:$4 sm:$0xff]  }
  0xe6   : > { %v4158_v37 = vld [vmem:[#allocation11 + $0x94] ss:$8 sps:$4 sm:$0xff]   ;;  %v4161_v39 = vld [vmem:[#allocation11 + $0x90] ss:$8 sps:$4 sm:$0xff]   ;;  %v4162_v40 = vld [vmem:[#allocation10 + $0xa4] ss:$8 sps:$4 sm:$0xff]  }
  0xe7   : > { %941 = vmatpush1.bf16.msra.mxu0 %v4124_v14  ;;  %v4164_v41 = vld [vmem:[#allocation11 + $0xa4] ss:$8 sps:$4 sm:$0xff]   ;;  %v4166_v42 = vld [vmem:[#allocation10 + $0xa0] ss:$8 sps:$4 sm:$0xff]   ;;  %v4168_v44 = vld [vmem:[#allocation10 + $0xb4] ss:$8 sps:$4 sm:$0xff]  }
  0xe8   : > { %1775 = vmatpush1.bf16.msra.mxu1 %v4125_v15  ;;  %942 = vmatprep.subr.bf16.mxu0 %v4126_v16  ;;  %v4167_v43 = vld [vmem:[#allocation11 + $0xa0] ss:$8 sps:$4 sm:$0xff]   ;;  %v4170_v45 = vld [vmem:[#allocation11 + $0xb4] ss:$8 sps:$4 sm:$0xff]   ;;  %v4172_v46 = vld [vmem:[#allocation10 + $0xb0] ss:$8 sps:$4 sm:$0xff]  }
  0xe9   : > { %1776 = vmatprep.subr.bf16.mxu1 %v4128_v17  ;;  %v462_v47 = vld [vmem:[%s5497_s6] sm:$0x7]  ;;  %v4173_v48 = vld [vmem:[#allocation11 + $0xb0] ss:$8 sps:$4 sm:$0xff]   ;;  %v4174_v50 = vld [vmem:[#allocation10 + $0xc4] ss:$8 sps:$4 sm:$0xff]  }
  0xea   : > { %v3570_v49 = vmul.f32 -1.442695, %v462_v47  ;;  %v4200_v51 = vld [vmem:[%s5110_s12 + $0x4] ss:$16 sps:$4 sm:$0xff]   ;;  %v4178_v53 = vld [vmem:[#allocation10 + $0xc0] ss:$8 sps:$4 sm:$0xff]  }
  0xeb   : > { %943 = vmatpush1.bf16.msra.mxu0 %v4130_v18  ;;  %v4176_v52 = vld [vmem:[#allocation11 + $0xc4] ss:$8 sps:$4 sm:$0xff]   ;;  %1800 = vmatprep.mubr.bf16.mxu1 %v4200_v51  ;;  %v4179_v54 = vld [vmem:[#allocation11 + $0xc0] ss:$8 sps:$4 sm:$0xff]   ;;  %v4180_v55 = vld [vmem:[#allocation10 + $0xd4] ss:$8 sps:$4 sm:$0xff]  }
  0xec   : > { %1777 = vmatpush1.bf16.msra.mxu1 %v4131_v19  ;;  %944 = vmatprep.subr.bf16.mxu0 %v4132_v20  ;;  %4510 = vpow2.f32 %v3570_v49  ;;  %v4182_v56 = vld [vmem:[#allocation11 + $0xd4] ss:$8 sps:$4 sm:$0xff]   ;;  %v4184_v57 = vld [vmem:[#allocation10 + $0xd0] ss:$8 sps:$4 sm:$0xff]   ;;  %v4186_v59 = vld [vmem:[#allocation10 + $0xe4] ss:$8 sps:$4 sm:$0xff]  }
  0xed   : > { %1778 = vmatprep.subr.bf16.mxu1 %v4134_v21  ;;  %v4185_v58 = vld [vmem:[#allocation11 + $0xd0] ss:$8 sps:$4 sm:$0xff]   ;;  %v4188_v60 = vld [vmem:[#allocation11 + $0xe4] ss:$8 sps:$4 sm:$0xff]   ;;  %v4190_v62 = vld [vmem:[#allocation10 + $0xe0] ss:$8 sps:$4 sm:$0xff]  }
  0xee   : > { %v4191_v63 = vld [vmem:[#allocation11 + $0xe0] ss:$8 sps:$4 sm:$0xff]   ;;  %v4192_v1 = vld [vmem:[#allocation10 + $0xf4] ss:$8 sps:$4 sm:$0xff]   ;;  %v4196_v3 = vld [vmem:[#allocation10 + $0xf0] ss:$8 sps:$4 sm:$0xff]  }
  0xef   : > { %945 = vmatpush1.bf16.msra.mxu0 %v4136_v22  ;;  %v4194_v2 = vld [vmem:[#allocation11 + $0xf4] ss:$8 sps:$4 sm:$0xff]   ;;  %v4197_v5 = vld [vmem:[#allocation11 + $0xf0] ss:$8 sps:$4 sm:$0xff]   ;;  %v4203_v6 = vld [vmem:[#allocation11 + $0x104] ss:$8 sps:$4 sm:$0xff]  }
  0xf0   : > { %1779 = vmatpush1.bf16.msra.mxu1 %v4137_v23  ;;  %946 = vmatprep.subr.bf16.mxu0 %v4138_v24  ;;  %v478_v7 = vld [vmem:[%s5121_s15] sm:$0xff]  ;;  %v5140_v8 = vshrl.u32 %v559_v4, 7  ;;  %v4206_v13 = vld [vmem:[#allocation11 + $0x114] ss:$8 sps:$4 sm:$0xff]   ;;  %v480_v14 = vld [vmem:[%s5121_s15 + $0xc] sm:$0xff]  ;;  %s3569_s18 = sshll.u32 %s5107_s29, 9 }
  0xf1   : > { %1780 = vmatprep.subr.bf16.mxu1 %v4140_v25  ;;  %v4198_v9 = vld [vmem:[%s5110_s12] ss:$16 sps:$4 sm:$0xff]   ;;  %v4207_v11 = vld [vmem:[%s5110_s12 + $0x24] ss:$16 sps:$4 sm:$0xff]   ;;  %v482_v18 = vld [vmem:[%s5121_s15 + $0x18] sm:$0xff]  ;;  %v510_v21 = vunpack.c.l.bf16 %v478_v7  ;;  %v511_v24 = vunpack.c.h.bf16 %v478_v7  ;;  %v513_v25 = vunpack.c.l.bf16 %v480_v14  ;;  %s5369_s17 = scalar_lea.vmem [#allocation14], %s3569_s18 }
  0xf2   : > { %v4201_v10 = vld [vmem:[#allocation11 + $0x100] ss:$8 sps:$4 sm:$0xff]   ;;  %v4238_v12 = vld [vmem:[#allocation10 + $0x104] ss:$8 sps:$4 sm:$0xff]   ;;  %v565_v15 = vsub.s32 1, %v5140_v8  ;;  %v569_v16 = vsub.s32 2, %v5140_v8 }
  0xf3   : > { %947 = vmatpush1.bf16.msra.mxu0 %v4142_v26  ;;  %v561_v17 = vsub.s32 0, %v5140_v8  ;;  %v484_v19 = vld [vmem:[%s5121_s15 + $0x24] sm:$0xff]  ;;  %v4204_v22 = vld [vmem:[#allocation11 + $0x110] ss:$8 sps:$4 sm:$0xff]   ;;  %v514_v26 = vunpack.c.h.bf16 %v480_v14  ;;  %s5563_s0 = sld [smem:[#allocation23_spill]]  ;;  %s3402_s14 = sshll.u32 %s5369_s17, 4  ;;  %s5437_s14 = int_to_ptr.vmem [resolvable:$true] %s3402_s14 }
  0xf4   : > { %1781 = vmatpush1.bf16.msra.mxu1 %v4143_v27  ;;  %948 = vmatprep.subr.bf16.mxu0 %v4144_v28  ;;  %v4209_v27 = vld [vmem:[%s5110_s12 + $0x20] ss:$16 sps:$4 sm:$0xff]   ;;  %v4212_v28 = vld [vmem:[#allocation11 + $0x124] ss:$8 sps:$4 sm:$0xff]   ;;  %s5564_s27 = sld [smem:[#allocation27_spill]]  ;;  %s3386_s20 = scalar_lea.sflag [#allocation6], %s5107_s29 }
  0xf5   : > { %1782 = vmatprep.subr.bf16.mxu1 %v4146_v29  ;;  %v517_v29 = vunpack.c.h.bf16 %v482_v18  ;;  %v4251_v14 = vld [vmem:[#allocation10 + $0x120] ss:$8 sps:$4 sm:$0xff]   ;;  %s5565_s8 = sld [smem:[#allocation32_spill]]  ;;  %s4690_s1 = scalar_lea.vmem %s5437_s14, 8192 }
  0xf6   : > { %v4511_v61 = vpop.eup %4510  ;;  %p4691_p6 = scmp.ne.s32.totalorder %s5437_s14, %s4690_s1  ;;  %s4803_s16 = smov [#allocation14]  }
  0xf7   : > { %949 = vmatpush1.bf16.msra.mxu0 %v4148_v30  ;;  %v466_v0 = vadd.f32 1.0, %v4511_v61  ;;  %v520_v30 = vunpack.c.h.bf16 %v484_v19  ;;  %s4694_s30 = sshll.u32 %s4803_s16, 4  ;;  %s4695_s30 = int_to_ptr.vmem [resolvable:$false] %s4694_s30 }
  0xf8   : > { %1783 = vmatpush1.bf16.msra.mxu1 %v4149_v31  ;;  %950 = vmatprep.subr.bf16.mxu0 %v4150_v32  ;;  %v4210_v31 = vld [vmem:[#allocation11 + $0x120] ss:$8 sps:$4 sm:$0xff]   ;;  %s4696_s21 = scalar_lea.vmem %s4695_s30, 16384  ;;  %p4697_p11 = scmp.lt.s32.totalorder %s5437_s14, %s4695_s30 }
  0xf9   : > { %1784 = vmatprep.subr.bf16.mxu1 %v4152_v33  ;;  %4512 = vrcp.f32 %v466_v0  ;;  %v492_v0 = vld [vmem:[%s5121_s15 + $0x54] sm:$0xff]  ;;  %s3853_s24 = sshll.u32 %s5563_s0, 13  ;;  %p4698_p8 = scmp.lt.s32.totalorder %s4696_s21, %s4690_s1 }
  0xfa   : > { %p5566_p13 = scmp.ne.s32.totalorder %s5564_s27, 0 }
  0xfb   : > { %951 = vmatpush1.bf16.msra.mxu0 %v4154_v34  ;;  %s5435_s19 = scalar_lea.hbm %s5565_s8, %s3853_s24  ;;  %p4699_p1 = por %p4698_p8, %p4697_p11 }
  0xfc   : > { %1785 = vmatpush1.bf16.msra.mxu1 %v4155_v35  ;;  %952 = vmatprep.subr.bf16.mxu0 %v4156_v36  ;;  %v5162_v35 = vld [vmem:[%s5121_s15 + $0x30] sm:$0xff]  ;;  %v5165_v36 = vld [vmem:[%s5121_s15 + $0x3c] sm:$0xff]  ;;  %p4692_p7 = pnand %p4691_p6, %p5566_p13 }
  0xfd   : > { %1786 = vmatprep.subr.bf16.mxu1 %v4158_v37  ;;  %v4216_v37 = vld [vmem:[%s5110_s12 + $0x44] ss:$16 sps:$4 sm:$0xff]   ;;  %v523_v49 = vunpack.c.h.bf16 %v5162_v35  ;;  %v522_v4 = vunpack.c.l.bf16 %v5162_v35 }
  0xfe   : > { %p4693_p12 = pneg %p4692_p7 }
  0xff   : > { %953 = vmatpush1.bf16.msra.mxu0 %v4160_v38 }
 0x100   : > { %1787 = vmatpush1.bf16.msra.mxu1 %v4161_v39  ;;  %954 = vmatprep.subr.bf16.mxu0 %v4162_v40  ;;  %p4700_p10 = pnand %p4699_p1, %p4693_p12 }
 0x101   : > { %1788 = vmatprep.subr.bf16.mxu1 %v4164_v41 }
 0x103   : > { %955 = vmatpush1.bf16.msra.mxu0 %v4166_v42  ;;  %v4513_v20 = vpop.eup %4512  ;;  %v4215_v42 = vld [vmem:[#allocation11 + $0x134] ss:$8 sps:$4 sm:$0xff]  }
 0x104   : > { %1789 = vmatpush1.bf16.msra.mxu1 %v4167_v43  ;;  %956 = vmatprep.subr.bf16.mxu0 %v4168_v44  ;;  %v469_v23 = vmul.f32 0.33333334, %v4513_v20  ;;  %v5190_v20 = vld [vmem:[%s5121_s15 + $0x60] sm:$0xff] }
 0x105   : > { %1790 = vmatprep.subr.bf16.mxu1 %v4170_v45  ;;  %v516_v45 = vunpack.c.l.bf16 %v482_v18 }
 0x106   : > { %v5153_v32 = vrot.slane %v469_v23, %v565_v15  ;;  %v5155_v33 = vrot.slane %v469_v23, %v569_v16  ;;  %v5159_v34 = vrot.slane %v469_v23, %v561_v17 }
 0x107   : > { %957 = vmatpush1.bf16.msra.mxu0 %v4172_v46  ;;  %v519_v46 = vunpack.c.l.bf16 %v484_v19  ;;  %v4228_v19 = vld [vmem:[#allocation11 + $0x160] ss:$8 sps:$4 sm:$0xff]  }
 0x108   : > { %1791 = vmatpush1.bf16.msra.mxu1 %v4173_v48  ;;  %958 = vmatprep.subr.bf16.mxu0 %v4174_v50  ;;  %v575_v38 = vmul.f32 %v5153_v32, %v511_v24  ;;  %v578_v39 = vmul.f32 %v5153_v32, %v514_v26  ;;  %v574_v40 = vmul.f32 %v5159_v34, %v510_v21  ;;  %v526_v50 = vunpack.c.h.bf16 %v5165_v36  ;;  %v4260_v21 = vld [vmem:[#allocation10 + $0x134] ss:$8 sps:$4 sm:$0xff]   ;;  %v496_v24 = vld [vmem:[%s5121_s15 + $0x6c] sm:$0xff] }
 0x109   : > { %1792 = vmatprep.subr.bf16.mxu1 %v4176_v52  ;;  %v577_v41 = vmul.f32 %v5159_v34, %v513_v25  ;;  %v581_v43 = vmul.f32 %v5153_v32, %v517_v29  ;;  %v584_v44 = vmul.f32 %v5153_v32, %v520_v30  ;;  %v4213_v52 = vld [vmem:[#allocation11 + $0x130] ss:$8 sps:$4 sm:$0xff]   ;;  %v586_v16 = vmul.f32 %v5159_v34, %v522_v4  ;;  %v4234_v25 = vld [vmem:[%s5110_s12 + $0x84] ss:$16 sps:$4 sm:$0xff]  }
 0x10a   : > { %v623_v47 = vpack.c.bf16 %v578_v39, %v575_v38  ;;  %v590_v61 = vmul.f32 %v5153_v32, %v526_v50  ;;  %v4233_v26 = vld [vmem:[#allocation11 + $0x174] ss:$8 sps:$4 sm:$0xff]   ;;  %v531_v30 = vunpack.c.l.bf16 %v492_v0  ;;  %v4231_v38 = vld [vmem:[#allocation11 + $0x170] ss:$8 sps:$4 sm:$0xff]  }
 0x10b   : > { %959 = vmatpush1.bf16.msra.mxu0 %v4178_v53  ;;  %v622_v48 = vpack.c.bf16 %v577_v41, %v574_v40  ;;  %v626_v51 = vpack.c.bf16 %v584_v44, %v581_v43  ;;  %v4221_v53 = vld [vmem:[#allocation11 + $0x144] ss:$8 sps:$4 sm:$0xff]   ;;  %v4239_v39 = vld [vmem:[%s5110_s12 + $0x80] ss:$16 sps:$4 sm:$0xff]   ;;  %v4275_v44 = vld [vmem:[#allocation10 + $0x154] ss:$8 sps:$4 sm:$0xff]  }
 0x10c   : > { %1793 = vmatpush1.bf16.msra.mxu1 %v4179_v54  ;;  %960 = vmatprep.subr.bf16.mxu0 %v4180_v55  ;;  %v4236_v54 = vld [vmem:[#allocation10 + $0x100] ss:$8 sps:$4 sm:$0xff]   ;;  %v4242_v40 = vld [vmem:[#allocation11 + $0x184] ss:$8 sps:$4 sm:$0xff]   ;;  %v595_v43 = vmul.f32 %v5159_v34, %v531_v30  ;;  %v508_v30 = vld [vmem:[%s5121_s15 + $0xb4] sm:$0xff] }
 0x10d   : > { %1794 = vmatprep.subr.bf16.mxu1 %v4182_v56  ;;  %966 = vmatprep.mubr.bf16.mxu0 %v623_v47  ;;  %v4218_v55 = vld [vmem:[%s5110_s12 + $0x40] ss:$16 sps:$4 sm:$0xff]   ;;  %v4245_v56 = vld [vmem:[#allocation10 + $0x114] ss:$8 sps:$4 sm:$0xff]  }
 0x10e   : > { %v4266_v41 = vld [vmem:[#allocation10 + $0x140] ss:$8 sps:$4 sm:$0xff]   ;;  %v4249_v50 = vld [vmem:[%s5110_s12 + $0xa4] ss:$16 sps:$4 sm:$0xff]  }
 0x10f   : > { %961 = vmatpush1.bf16.msra.mxu0 %v4184_v57  ;;  %v580_v57 = vmul.f32 %v5159_v34, %v516_v45  ;;  %v4240_v47 = vld [vmem:[#allocation11 + $0x180] ss:$8 sps:$4 sm:$0xff]  }
 0x110   : > { %1795 = vmatpush1.bf16.msra.mxu1 %v4185_v58  ;;  %962 = vmatprep.subr.bf16.mxu0 %v4186_v59  ;;  %v583_v58 = vmul.f32 %v5159_v34, %v519_v46  ;;  %v4219_v59 = vld [vmem:[#allocation11 + $0x140] ss:$8 sps:$4 sm:$0xff]  }
 0x111   : > { %1796 = vmatprep.subr.bf16.mxu1 %v4188_v60  ;;  %v587_v60 = vmul.f32 %v5153_v32, %v523_v49  ;;  %v500_v49 = vld [vmem:[%s5121_s15 + $0x84] sm:$0xff] }
 0x113   : > { %963 = vmatpush1.bf16.msra.mxu0 %v4190_v62  ;;  %v4224_v62 = vld [vmem:[#allocation11 + $0x154] ss:$8 sps:$4 sm:$0xff]   ;;  %v629_v7 = vpack.c.bf16 %v590_v61, %v587_v60  ;;  %v4246_v60 = vld [vmem:[#allocation11 + $0x190] ss:$8 sps:$4 sm:$0xff]   ;;  %v4257_v61 = vld [vmem:[#allocation11 + $0x1a4] ss:$8 sps:$4 sm:$0xff]  }
 0x114   : > { %1797 = vmatpush1.bf16.msra.mxu1 %v4191_v63  ;;  %964 = vmatprep.subr.bf16.mxu0 %v4192_v1  ;;  %v490_v63 = vld [vmem:[%s5121_s15 + $0x48] sm:$0xff]  ;;  %v4225_v1 = vld [vmem:[%s5110_s12 + $0x64] ss:$16 sps:$4 sm:$0xff]  }
 0x115   : > { %1798 = vmatprep.subr.bf16.mxu1 %v4194_v2  ;;  %v4243_v2 = vld [vmem:[#allocation10 + $0x110] ss:$8 sps:$4 sm:$0xff]   ;;  %v528_v29 = vunpack.c.l.bf16 %v490_v63 }
 0x117   : > { %965 = vmatpush1.bf16.msra.mxu0 %v4196_v3  ;;  %v625_v3 = vpack.c.bf16 %v583_v58, %v580_v57 }
 0x118   : > { %1799 = vmatpush1.bf16.msra.mxu1 %v4197_v5  ;;  %1047 = vmatprep.subr.bf16.mxu0 %v4238_v12  ;;  %v525_v5 = vunpack.c.l.bf16 %v5165_v36  ;;  %v4230_v12 = vld [vmem:[#allocation11 + $0x164] ss:$8 sps:$4 sm:$0xff]   ;;  %v535_v36 = vunpack.c.h.bf16 %v5190_v20 }
 0x119   : > { %1881 = vmatprep.subr.bf16.mxu1 %v4203_v6  ;;  %v4253_v6 = vld [vmem:[#allocation10 + $0x124] ss:$8 sps:$4 sm:$0xff]  }
 0x11a   : > { %967 = vmatmul.mubr.bf16.vlgmr.msra.gmra.mrb[0].mxu0 %v622_v48  ;;  %v589_v18 = vmul.f32 %v5159_v34, %v525_v5  ;;  %v599_v45 = vmul.f32 %v5153_v32, %v535_v36  ;;  %v498_v48 = vld [vmem:[%s5121_s15 + $0x78] sm:$0xff] }
 0x11b   : > { %1801 = vmatmul.mubr.bf16.vlgmr.msra.gmra.mrb[0].mxu1 %v4198_v9  ;;  %976 = vmatprep.mubr.bf16.mxu0 %v626_v51  ;;  %v4222_v9 = vld [vmem:[#allocation11 + $0x150] ss:$8 sps:$4 sm:$0xff]   ;;  %v4248_v51 = vld [vmem:[#allocation11 + $0x194] ss:$8 sps:$4 sm:$0xff]   ;;  %v541_v58 = vunpack.c.h.bf16 %v498_v48 }
 0x11c   : > { %1882 = vmatpush1.bf16.msra.mxu1 %v4201_v10  ;;  %1810 = vmatprep.mubr.bf16.mxu1 %v4207_v11  ;;  %v529_v10 = vunpack.c.h.bf16 %v490_v63  ;;  %v532_v11 = vunpack.c.h.bf16 %v492_v0  ;;  %v4281_v63 = vld [vmem:[#allocation10 + $0x160] ss:$8 sps:$4 sm:$0xff]  }
 0x11d   : > { %1883 = vmatprep.subr.bf16.mxu1 %v4206_v13  ;;  %1048 = vmatpush1.bf16.msra.mxu0 %v4236_v54  ;;  %v4227_v13 = vld [vmem:[%s5110_s12 + $0x60] ss:$16 sps:$4 sm:$0xff]   ;;  %v534_v54 = vunpack.c.l.bf16 %v5190_v20  ;;  %v605_v4 = vmul.f32 %v5153_v32, %v541_v58 }
 0x11e   : > { %1049 = vmatprep.subr.bf16.mxu0 %v4245_v56  ;;  %v596_v23 = vmul.f32 %v5153_v32, %v532_v11  ;;  %v4283_v56 = vld [vmem:[#allocation10 + $0x164] ss:$8 sps:$4 sm:$0xff]   ;;  %v4288_v11 = vld [vmem:[#allocation10 + $0x170] ss:$8 sps:$4 sm:$0xff]  }
 0x11f   : > { %v598_v0 = vmul.f32 %v5159_v34, %v534_v54  ;;  %v555_v54 = vunpack.c.l.bf16 %v508_v30 }
 0x120   : > { %1884 = vmatpush1.bf16.msra.mxu1 %v4204_v22  ;;  %v593_v22 = vmul.f32 %v5153_v32, %v529_v10  ;;  %v4263_v10 = vld [vmem:[#allocation11 + $0x1b4] ss:$8 sps:$4 sm:$0xff]  }
 0x121   : > { %1885 = vmatprep.subr.bf16.mxu1 %v4212_v28  ;;  %1050 = vmatpush1.bf16.msra.mxu0 %v4243_v2  ;;  %v628_v28 = vpack.c.bf16 %v589_v18, %v586_v16  ;;  %v4255_v2 = vld [vmem:[#allocation11 + $0x1a0] ss:$8 sps:$4 sm:$0xff]   ;;  %v4320_v16 = vld [vmem:[#allocation13 + $0x4] ss:$16 sps:$4 sm:$0xff]   ;;  %v619_v58 = vmul.f32 %v5159_v34, %v555_v54 }
 0x122   : > { %977 = vmatmul.mubr.bf16.gmra.mrb[4].mxu0 %v625_v3  ;;  %1051 = vmatprep.subr.bf16.mxu0 %v4253_v6  ;;  %v632_v35 = vpack.c.bf16 %v596_v23, %v593_v22  ;;  %v4290_v3 = vld [vmem:[#allocation10 + $0x174] ss:$8 sps:$4 sm:$0xff]   ;;  %v4269_v22 = vld [vmem:[%s5110_s12 + $0xc0] ss:$16 sps:$4 sm:$0xff]   ;;  %v4272_v23 = vld [vmem:[#allocation11 + $0x1c4] ss:$8 sps:$4 sm:$0xff]  }
 0x123   : > { %1811 = vmatmul.mubr.bf16.gmra.mrb[4].mxu1 %v4209_v27  ;;  %986 = vmatprep.mubr.bf16.mxu0 %v629_v7  ;;  %v4258_v27 = vld [vmem:[#allocation10 + $0x130] ss:$8 sps:$4 sm:$0xff]   ;;  %v504_v7 = vld [vmem:[%s5121_s15 + $0x9c] sm:$0xff]  ;;  %v4350_v54 = vld [vmem:[#allocation13 + $0xa4] ss:$16 sps:$4 sm:$0xff]  }
 0x124   : > { %1886 = vmatpush1.bf16.msra.mxu1 %v4210_v31  ;;  %1820 = vmatprep.mubr.bf16.mxu1 %v4216_v37  ;;  %v4268_v31 = vld [vmem:[#allocation10 + $0x144] ss:$8 sps:$4 sm:$0xff]   ;;  %v538_v37 = vunpack.c.h.bf16 %v496_v24  ;;  %v502_v6 = vld [vmem:[%s5121_s15 + $0x90] sm:$0xff]  ;;  %v550_v20 = vunpack.c.h.bf16 %v504_v7 }
 0x125   : > { %1887 = vmatprep.subr.bf16.mxu1 %v4215_v42  ;;  %1052 = vmatpush1.bf16.msra.mxu0 %v4251_v14  ;;  %v592_v42 = vmul.f32 %v5159_v34, %v528_v29  ;;  %v543_v14 = vunpack.c.l.bf16 %v500_v49 }
 0x126   : > { %1053 = vmatprep.subr.bf16.mxu0 %v4260_v21  ;;  %v602_v46 = vmul.f32 %v5153_v32, %v538_v37  ;;  %v4261_v21 = vld [vmem:[#allocation11 + $0x1b0] ss:$8 sps:$4 sm:$0xff]   ;;  %v614_v29 = vmul.f32 %v5153_v32, %v550_v20  ;;  %v546_v37 = vunpack.c.l.bf16 %v502_v6 }
 0x127   : > { %v4339_v20 = vld [vmem:[#allocation13 + $0x68] ss:$16 sps:$4 sm:$0xff]  }
 0x128   : > { %1888 = vmatpush1.bf16.msra.mxu1 %v4213_v52  ;;  %v4273_v52 = vld [vmem:[#allocation10 + $0x150] ss:$8 sps:$4 sm:$0xff]   ;;  %v635_v57 = vpack.c.bf16 %v602_v46, %v599_v45 }
 0x129   : > { %1889 = vmatprep.subr.bf16.mxu1 %v4221_v53  ;;  %1054 = vmatpush1.bf16.msra.mxu0 %v4258_v27  ;;  %v631_v53 = vpack.c.bf16 %v595_v43, %v592_v42  ;;  %v506_v27 = vld [vmem:[%s5121_s15 + $0xa8] sm:$0xff]  ;;  %v4276_v42 = vld [vmem:[#allocation11 + $0x1d0] ss:$8 sps:$4 sm:$0xff]  }
 0x12a   : > { %987 = vmatmul.mubr.bf16.gmra.mrb[8].mxu0 %v628_v28  ;;  %1055 = vmatprep.subr.bf16.mxu0 %v4268_v31  ;;  %v4279_v31 = vld [vmem:[%s5110_s12 + $0xe4] ss:$16 sps:$4 sm:$0xff]   ;;  %v4284_v46 = vld [vmem:[%s5110_s12 + $0xe0] ss:$16 sps:$4 sm:$0xff]  }
 0x12b   : > { %1821 = vmatmul.mubr.bf16.gmra.mrb[8].mxu1 %v4218_v55  ;;  %996 = vmatprep.mubr.bf16.mxu0 %v632_v35  ;;  %v537_v55 = vunpack.c.l.bf16 %v496_v24  ;;  %v4278_v35 = vld [vmem:[#allocation11 + $0x1d4] ss:$8 sps:$4 sm:$0xff]   ;;  %v4287_v43 = vld [vmem:[#allocation11 + $0x1e4] ss:$8 sps:$4 sm:$0xff]  }
 0x12c   : > { %1890 = vmatpush1.bf16.msra.mxu1 %v4219_v59  ;;  %1830 = vmatprep.mubr.bf16.mxu1 %v4225_v1  ;;  %v544_v59 = vunpack.c.h.bf16 %v500_v49  ;;  %v4285_v49 = vld [vmem:[#allocation11 + $0x1e0] ss:$8 sps:$4 sm:$0xff]  }
 0x12d   : > { %1891 = vmatprep.subr.bf16.mxu1 %v4224_v62  ;;  %1056 = vmatpush1.bf16.msra.mxu0 %v4266_v41  ;;  %v4254_v62 = vld [vmem:[%s5110_s12 + $0xa0] ss:$16 sps:$4 sm:$0xff]   ;;  %v601_v1 = vmul.f32 %v5159_v34, %v537_v55  ;;  %v556_v41 = vunpack.c.h.bf16 %v508_v30  ;;  %v4353_v30 = vld [vmem:[#allocation13 + $0xac] ss:$16 sps:$4 sm:$0xff]  }
 0x12e   : > { %1057 = vmatprep.subr.bf16.mxu0 %v4275_v44  ;;  %v608_v5 = vmul.f32 %v5153_v32, %v544_v59  ;;  %v610_v44 = vmul.f32 %v5159_v34, %v546_v37  ;;  %v4294_v59 = vld [vmem:[%s5110_s12 + $0x8] ss:$16 sps:$4 sm:$0xff]  }
 0x130   : > { %1892 = vmatpush1.bf16.msra.mxu1 %v4222_v9  ;;  %v4264_v9 = vld [vmem:[%s5110_s12 + $0xc4] ss:$16 sps:$4 sm:$0xff]   ;;  %v638_v18 = vpack.c.bf16 %v608_v5, %v605_v4 }
 0x131   : > { %1893 = vmatprep.subr.bf16.mxu1 %v4230_v12  ;;  %1058 = vmatpush1.bf16.msra.mxu0 %v4273_v52  ;;  %v634_v12 = vpack.c.bf16 %v601_v1, %v598_v0 }
 0x132   : > { %997 = vmatmul.mubr.bf16.gmra.mrb[12].mxu0 %v631_v53  ;;  %1059 = vmatprep.subr.bf16.mxu0 %v4283_v56  ;;  %v552_v53 = vunpack.c.l.bf16 %v506_v27  ;;  %v4291_v56 = vld [vmem:[#allocation11 + $0x1f0] ss:$8 sps:$4 sm:$0xff]  }
 0x133   : > { %1831 = vmatmul.mubr.bf16.gmra.mrb[12].mxu1 %v4227_v13  ;;  %1006 = vmatprep.mubr.bf16.mxu0 %v635_v57  ;;  %v540_v13 = vunpack.c.l.bf16 %v498_v48  ;;  %v620_v48 = vmul.f32 %v5153_v32, %v556_v41  ;;  %v4323_v57 = vld [vmem:[#allocation13 + $0xc] ss:$16 sps:$4 sm:$0xff]  }
 0x134   : > { %1894 = vmatpush1.bf16.msra.mxu1 %v4228_v19  ;;  %1840 = vmatprep.mubr.bf16.mxu1 %v4234_v25  ;;  %v547_v19 = vunpack.c.h.bf16 %v502_v6  ;;  %v607_v25 = vmul.f32 %v5159_v34, %v543_v14  ;;  %v483_v6 = vld [vmem:[%s5121_s15 + $0x20] ss:$12 sps:$4 sm:$0xff]   ;;  %v491_v41 = vld [vmem:[%s5121_s15 + $0x50] ss:$12 sps:$4 sm:$0xff]  }
 0x135   : > { %1895 = vmatprep.subr.bf16.mxu1 %v4233_v26  ;;  %1060 = vmatpush1.bf16.msra.mxu0 %v4281_v63  ;;  %v604_v24 = vmul.f32 %v5159_v34, %v540_v13  ;;  %v4270_v26 = vld [vmem:[#allocation11 + $0x1c0] ss:$8 sps:$4 sm:$0xff]   ;;  %v4329_v63 = vld [vmem:[#allocation13 + $0x2c] ss:$16 sps:$4 sm:$0xff]   ;;  %v518_v14 = vunpack.c.l.bf16 %v483_v6 }
 0x136   : > { %1061 = vmatprep.subr.bf16.mxu0 %v4290_v3  ;;  %v611_v28 = vmul.f32 %v5153_v32, %v547_v19  ;;  %v4327_v3 = vld [vmem:[#allocation13 + $0x28] ss:$16 sps:$4 sm:$0xff]   ;;  %v4326_v19 = vld [vmem:[#allocation13 + $0x24] ss:$16 sps:$4 sm:$0xff]  }
 0x137   : > { %v637_v36 = vpack.c.bf16 %v607_v25, %v604_v24  ;;  %v4347_v24 = vld [vmem:[#allocation13 + $0x8c] ss:$16 sps:$4 sm:$0xff]   ;;  %v582_v25 = vmul.f32 %v5155_v33, %v518_v14 }
 0x138   : > { %1896 = vmatpush1.bf16.msra.mxu1 %v4231_v38  ;;  %v549_v38 = vunpack.c.l.bf16 %v504_v7  ;;  %v4299_v7 = vld [vmem:[%s5110_s12 + $0x28] ss:$16 sps:$4 sm:$0xff]   ;;  %v4312_v14 = vld [vmem:[%s5110_s12 + $0xcc] ss:$16 sps:$4 sm:$0xff]  }
 0x139   : > { %1897 = vmatprep.subr.bf16.mxu1 %v4242_v40  ;;  %1062 = vmatpush1.bf16.msra.mxu0 %v4288_v11  ;;  %v553_v40 = vunpack.c.h.bf16 %v506_v27  ;;  %v4333_v11 = vld [vmem:[#allocation13 + $0x48] ss:$16 sps:$4 sm:$0xff]   ;;  %v4303_v27 = vld [vmem:[%s5110_s12 + $0x6c] ss:$16 sps:$4 sm:$0xff]  }
 0x13a   : > { %1007 = vmatmul.mubr.bf16.gmra.mrb[16].mxu0 %v634_v12  ;;  %2549 = vmatprep.subr.bf16.mxu0 %v4320_v16  ;;  %v613_v45 = vmul.f32 %v5159_v34, %v549_v38  ;;  %v4341_v12 = vld [vmem:[#allocation13 + $0x6c] ss:$16 sps:$4 sm:$0xff]   ;;  %v521_v16 = vunpack.c.h.bf16 %v483_v6  ;;  %v4338_v38 = vld [vmem:[#allocation13 + $0x64] ss:$16 sps:$4 sm:$0xff]  }
 0x13b   : > { %1841 = vmatmul.mubr.bf16.gmra.mrb[16].mxu1 %v4239_v39  ;;  %1016 = vmatprep.mubr.bf16.mxu0 %v638_v18  ;;  %v641_v39 = vpack.c.bf16 %v614_v29, %v611_v28  ;;  %v4318_v18 = vld [vmem:[#allocation13] ss:$16 sps:$4 sm:$0xff]   ;;  %v4332_v28 = vld [vmem:[#allocation13 + $0x44] ss:$16 sps:$4 sm:$0xff]   ;;  %v4345_v29 = vld [vmem:[#allocation13 + $0x88] ss:$16 sps:$4 sm:$0xff]  }
 0x13c   : > { %1898 = vmatpush1.bf16.msra.mxu1 %v4240_v47  ;;  %1850 = vmatprep.mubr.bf16.mxu1 %v4249_v50  ;;  %v617_v47 = vmul.f32 %v5153_v32, %v553_v40  ;;  %v4296_v50 = vld [vmem:[%s5110_s12 + $0xc] ss:$16 sps:$4 sm:$0xff]   ;;  %v640_v52 = vpack.c.bf16 %v613_v45, %v610_v44  ;;  %v616_v32 = vmul.f32 %v5159_v34, %v552_v53  ;;  %v533_v53 = vunpack.c.h.bf16 %v491_v41 }
 0x13d   : > { %1899 = vmatprep.subr.bf16.mxu1 %v4248_v51  ;;  %v4293_v51 = vld [vmem:[#allocation11 + $0x1f4] ss:$8 sps:$4 sm:$0xff]  }
 0x13e   : > { %v644_v55 = vpack.c.bf16 %v620_v48, %v617_v47  ;;  %v643_v0 = vpack.c.bf16 %v619_v58, %v616_v32  ;;  %v4335_v34 = vld [vmem:[#allocation13 + $0x4c] ss:$16 sps:$4 sm:$0xff]   ;;  %v4344_v47 = vld [vmem:[#allocation13 + $0x84] ss:$16 sps:$4 sm:$0xff]   ;;  %v4357_v48 = vld [vmem:[#allocation13 + $0xc8] ss:$16 sps:$4 sm:$0xff]  }
 0x13f   : > { %v4359_v40 = vld [vmem:[#allocation13 + $0xcc] ss:$16 sps:$4 sm:$0xff]   ;;  %v4308_v32 = vld [vmem:[%s5110_s12 + $0x88] ss:$16 sps:$4 sm:$0xff]   ;;  %v4348_v58 = vld [vmem:[#allocation13 + $0xa0] ss:$16 sps:$4 sm:$0xff]  }
 0x140   : > { %1900 = vmatpush1.bf16.msra.mxu1 %v4246_v60  ;;  %v479_v60 = vld [vmem:[%s5121_s15 + $0x8] ss:$12 sps:$4 sm:$0xff]  }
 0x141   : > { %1901 = vmatprep.subr.bf16.mxu1 %v4257_v61  ;;  %v4297_v61 = vld [vmem:[%s5110_s12 + $0x2c] ss:$16 sps:$4 sm:$0xff]   ;;  %v512_v1 = vunpack.c.l.bf16 %v479_v60 }
 0x142   : > { %1017 = vmatmul.mubr.bf16.gmra.mrb[20].mxu0 %v637_v36 }
 0x143   : > { %1851 = vmatmul.mubr.bf16.gmra.mrb[20].mxu1 %v4254_v62  ;;  %1026 = vmatprep.mubr.bf16.mxu0 %v641_v39  ;;  %v4321_v62 = vld [vmem:[#allocation13 + $0x8] ss:$16 sps:$4 sm:$0xff]   ;;  %v576_v4 = vmul.f32 %v5155_v33, %v512_v1  ;;  %v4354_v1 = vld [vmem:[#allocation13 + $0xc0] ss:$16 sps:$4 sm:$0xff]  }
 0x144   : > { %1902 = vmatpush1.bf16.msra.mxu1 %v4255_v2  ;;  %1860 = vmatprep.mubr.bf16.mxu1 %v4264_v9  ;;  %v515_v2 = vunpack.c.h.bf16 %v479_v60  ;;  %v4802_v9 = vmov 0   ;;  %v4351_v39 = vld [vmem:[#allocation13 + $0xa8] ss:$16 sps:$4 sm:$0xff]   ;;  %v597_v60 = vmul.f32 %v5155_v33, %v533_v53 }
 0x145   : > { %1903 = vmatprep.subr.bf16.mxu1 %v4263_v10  ;;  %v4300_v10 = vld [vmem:[%s5110_s12 + $0x4c] ss:$16 sps:$4 sm:$0xff]  }
 0x146   : > { %v579_v5 = vmul.f32 %v5155_v33, %v515_v2 }
 0x148   : > { %1904 = vmatpush1.bf16.msra.mxu1 %v4261_v21  ;;  %v624_v13 = vpack.c.bf16 %v579_v5, %v576_v4  ;;  %v487_v21 = vld [vmem:[%s5121_s15 + $0x38] ss:$12 sps:$4 sm:$0xff]  }
 0x149   : > { %1905 = vmatprep.subr.bf16.mxu1 %v4272_v23  ;;  %v4324_v23 = vld [vmem:[#allocation13 + $0x20] ss:$16 sps:$4 sm:$0xff]   ;;  %v524_v36 = vunpack.c.l.bf16 %v487_v21  ;;  %v527_v37 = vunpack.c.h.bf16 %v487_v21  ;;  %v4362_v4 = vld [vmem:[#allocation13 + $0xe4] ss:$16 sps:$4 sm:$0xff]   ;;  %v4375_v5 = vld [vmem:[#allocation13 + $0x128] ss:$16 sps:$4 sm:$0xff]  }
 0x14a   : > { %1027 = vmatmul.mubr.bf16.gmra.mrb[24].mxu0 %v640_v52  ;;  %v530_v52 = vunpack.c.l.bf16 %v491_v41  ;;  %v4401_v41 = vld [vmem:[#allocation13 + $0x1ac] ss:$16 sps:$4 sm:$0xff]  }
 0x14b   : > { %1861 = vmatmul.mubr.bf16.gmra.mrb[24].mxu1 %v4269_v22  ;;  %1036 = vmatprep.mubr.bf16.mxu0 %v644_v55  ;;  %v4302_v22 = vld [vmem:[%s5110_s12 + $0x48] ss:$16 sps:$4 sm:$0xff]   ;;  %v588_v44 = vmul.f32 %v5155_v33, %v524_v36  ;;  %v591_v45 = vmul.f32 %v5155_v33, %v527_v37  ;;  %v4380_v36 = vld [vmem:[#allocation13 + $0x144] ss:$16 sps:$4 sm:$0xff]  }
 0x14c   : > { %1906 = vmatpush1.bf16.msra.mxu1 %v4270_v26  ;;  %1870 = vmatprep.mubr.bf16.mxu1 %v4279_v31  ;;  %v585_v26 = vmul.f32 %v5155_v33, %v521_v16  ;;  %v4330_v31 = vld [vmem:[#allocation13 + $0x40] ss:$16 sps:$4 sm:$0xff]   ;;  %v4363_v55 = vld [vmem:[#allocation13 + $0xe8] ss:$16 sps:$4 sm:$0xff]   ;;  %v4368_v16 = vld [vmem:[#allocation13 + $0x104] ss:$16 sps:$4 sm:$0xff]  }
 0x14d   : > { %1907 = vmatprep.subr.bf16.mxu1 %v4278_v35  ;;  %v4393_v37 = vld [vmem:[#allocation13 + $0x188] ss:$16 sps:$4 sm:$0xff]  }
 0x14e   : > { %v627_v35 = vpack.c.bf16 %v585_v26, %v582_v25  ;;  %v4387_v25 = vld [vmem:[#allocation13 + $0x168] ss:$16 sps:$4 sm:$0xff]  }
 0x150   : > { %1908 = vmatpush1.bf16.msra.mxu1 %v4276_v42  ;;  %v4305_v42 = vld [vmem:[%s5110_s12 + $0x68] ss:$16 sps:$4 sm:$0xff]  }
 0x151   : > { %1909 = vmatprep.subr.bf16.mxu1 %v4287_v43  ;;  %v4336_v43 = vld [vmem:[#allocation13 + $0x60] ss:$16 sps:$4 sm:$0xff]  }
 0x152   : > { %1037 = vmatmul.mubr.bf16.gmra.mrb[28].mxu0 %v643_v0  ;;  %v4377_v0 = vld [vmem:[#allocation13 + $0x12c] ss:$16 sps:$4 sm:$0xff]  }
 0x153   : > { %1871 = vmatmul.mubr.bf16.gmra.mrb[28].mxu1 %v4284_v46  ;;  %1079 = vmatprep.mubr.bf16.mxu0 %v4802_v9  ;;  %v4306_v46 = vld [vmem:[%s5110_s12 + $0x8c] ss:$16 sps:$4 sm:$0xff]  }
 0x154   : > { %1910 = vmatpush1.bf16.msra.mxu1 %v4285_v49  ;;  %1913 = vmatprep.mubr.bf16.mxu1 %v4296_v50  ;;  %v4365_v49 = vld [vmem:[#allocation13 + $0xec] ss:$16 sps:$4 sm:$0xff]   ;;  %v4342_v50 = vld [vmem:[#allocation13 + $0x80] ss:$16 sps:$4 sm:$0xff]  }
 0x155   : > { %1911 = vmatprep.subr.bf16.mxu1 %v4293_v51  ;;  %v630_v51 = vpack.c.bf16 %v591_v45, %v588_v44  ;;  %v4399_v44 = vld [vmem:[#allocation13 + $0x1a8] ss:$16 sps:$4 sm:$0xff]  }
 0x158   : > { %1912 = vmatpush1.bf16.msra.mxu1 %v4291_v56  ;;  %v4371_v56 = vld [vmem:[#allocation13 + $0x10c] ss:$16 sps:$4 sm:$0xff]  }
 0x159   : > { %2662 = vmatprep.subr.bf16.mxu1 %v4323_v57  ;;  %v495_v57 = vld [vmem:[%s5121_s15 + $0x68] ss:$12 sps:$4 sm:$0xff]  }
 0x15a   : > { %1080 = vmatmul.mubr.bf16.vlgmr.msra.gmra.mrb[0].mxu0 %v624_v13  ;;  %v4360_v13 = vld [vmem:[#allocation13 + $0xe0] ss:$16 sps:$4 sm:$0xff]  }
 0x15b   : > { %1914 = vmatmul.mubr.bf16.vlgmr.msra.gmra.mrb[0].mxu1 %v4294_v59  ;;  %1089 = vmatprep.mubr.bf16.mxu0 %v4802_v9  ;;  %v594_v59 = vmul.f32 %v5155_v33, %v530_v52 }
 0x15c   : > { %1923 = vmatprep.mubr.bf16.mxu1 %v4297_v61  ;;  %2663 = vmatpush1.bf16.msra.mxu1 %v4321_v62  ;;  %v4309_v61 = vld [vmem:[%s5110_s12 + $0xac] ss:$16 sps:$4 sm:$0xff]   ;;  %v4356_v62 = vld [vmem:[#allocation13 + $0xc4] ss:$16 sps:$4 sm:$0xff]  }
 0x15d   : > { %2664 = vmatprep.subr.bf16.mxu1 %v4329_v63  ;;  %2550 = vmatpush1.bf16.msra.mxu0 %v4318_v18  ;;  %v4369_v63 = vld [vmem:[#allocation13 + $0x108] ss:$16 sps:$4 sm:$0xff]   ;;  %v633_v2 = vpack.c.bf16 %v597_v60, %v594_v59  ;;  %v4404_v59 = vld [vmem:[#allocation13 + $0x1c4] ss:$16 sps:$4 sm:$0xff]   ;;  %v4407_v60 = vld [vmem:[#allocation13 + $0x1cc] ss:$16 sps:$4 sm:$0xff]  }
 0x15e   : > { %2551 = vmatprep.subr.bf16.mxu0 %v4326_v19  ;;  %v4381_v18 = vld [vmem:[#allocation13 + $0x148] ss:$16 sps:$4 sm:$0xff]  }
 0x160   : > { %2665 = vmatpush1.bf16.msra.mxu1 %v4327_v3  ;;  %v536_v3 = vunpack.c.l.bf16 %v495_v57 }
 0x161   : > { %2666 = vmatprep.subr.bf16.mxu1 %v4335_v34  ;;  %2552 = vmatpush1.bf16.msra.mxu0 %v4324_v23  ;;  %v539_v34 = vunpack.c.h.bf16 %v495_v57  ;;  %v4366_v23 = vld [vmem:[#allocation13 + $0x100] ss:$16 sps:$4 sm:$0xff]  }
 0x162   : > { %2553 = vmatprep.subr.bf16.mxu0 %v4332_v28  ;;  %1090 = vmatmul.mubr.bf16.gmra.mrb[4].mxu0 %v627_v35  ;;  %v600_v6 = vmul.f32 %v5155_v33, %v536_v3  ;;  %v4395_v28 = vld [vmem:[#allocation13 + $0x18c] ss:$16 sps:$4 sm:$0xff]   ;;  %v470_v3 = vld [vmem:[%s5498_s7] sm:$0x3] }
 0x163   : > { %1924 = vmatmul.mubr.bf16.gmra.mrb[4].mxu1 %v4299_v7  ;;  %1099 = vmatprep.mubr.bf16.mxu0 %v4802_v9  ;;  %v603_v7 = vmul.f32 %v5155_v33, %v539_v34  ;;  %v4315_v35 = vld [vmem:[%s5110_s12 + $0xec] ss:$16 sps:$4 sm:$0xff]   ;;  %v3571_v34 = vmul.f32 -1.442695, %v470_v3 }
 0x164   : > { %1933 = vmatprep.mubr.bf16.mxu1 %v4300_v10  ;;  %2667 = vmatpush1.bf16.msra.mxu1 %v4333_v11  ;;  %v4383_v10 = vld [vmem:[#allocation13 + $0x14c] ss:$16 sps:$4 sm:$0xff]  }
 0x165   : > { %2668 = vmatprep.subr.bf16.mxu1 %v4341_v12  ;;  %2554 = vmatpush1.bf16.msra.mxu0 %v4330_v31  ;;  %v499_v11 = vld [vmem:[%s5121_s15 + $0x80] ss:$12 sps:$4 sm:$0xff]   ;;  %v4311_v12 = vld [vmem:[%s5110_s12 + $0xa8] ss:$16 sps:$4 sm:$0xff]   ;;  %v636_v19 = vpack.c.bf16 %v603_v7, %v600_v6  ;;  %4514 = vpow2.f32 %v3571_v34 }
 0x166   : > { %2555 = vmatprep.subr.bf16.mxu0 %v4338_v38  ;;  %v545_v21 = vunpack.c.h.bf16 %v499_v11  ;;  %v4372_v31 = vld [vmem:[#allocation13 + $0x120] ss:$16 sps:$4 sm:$0xff]  }
 0x167   : > { %v4438_v34 = vld [vmem:[#allocation7 + $0x80] ss:$16 sps:$4 sm:$0xff]  }
 0x168   : > { %2669 = vmatpush1.bf16.msra.mxu1 %v4339_v20  ;;  %v542_v20 = vunpack.c.l.bf16 %v499_v11 }
 0x169   : > { %2670 = vmatprep.subr.bf16.mxu1 %v4347_v24  ;;  %2556 = vmatpush1.bf16.msra.mxu0 %v4336_v43  ;;  %v4374_v24 = vld [vmem:[#allocation13 + $0x124] ss:$16 sps:$4 sm:$0xff]  }
 0x16a   : > { %2557 = vmatprep.subr.bf16.mxu0 %v4344_v47  ;;  %1100 = vmatmul.mubr.bf16.gmra.mrb[8].mxu0 %v630_v51  ;;  %v606_v26 = vmul.f32 %v5155_v33, %v542_v20  ;;  %v4386_v43 = vld [vmem:[#allocation13 + $0x164] ss:$16 sps:$4 sm:$0xff]   ;;  %v507_v47 = vld [vmem:[%s5121_s15 + $0xb0] ss:$12 sps:$4 sm:$0xff]  }
 0x16b   : > { %1934 = vmatmul.mubr.bf16.gmra.mrb[8].mxu1 %v4302_v22  ;;  %1109 = vmatprep.mubr.bf16.mxu0 %v4802_v9  ;;  %v4389_v22 = vld [vmem:[#allocation13 + $0x16c] ss:$16 sps:$4 sm:$0xff]   ;;  %v554_v52 = vunpack.c.l.bf16 %v507_v47  ;;  %v557_v53 = vunpack.c.h.bf16 %v507_v47  ;;  %v4426_v47 = vld [vmem:[#allocation7 + $0x40] ss:$16 sps:$4 sm:$0xff]  }
 0x16c   : > { %1943 = vmatprep.mubr.bf16.mxu1 %v4303_v27  ;;  %2671 = vmatpush1.bf16.msra.mxu1 %v4345_v29  ;;  %v609_v27 = vmul.f32 %v5155_v33, %v545_v21  ;;  %v503_v29 = vld [vmem:[%s5121_s15 + $0x98] ss:$12 sps:$4 sm:$0xff]  }
 0x16d   : > { %2672 = vmatprep.subr.bf16.mxu1 %v4353_v30  ;;  %2558 = vmatpush1.bf16.msra.mxu0 %v4342_v50  ;;  %v4314_v30 = vld [vmem:[%s5110_s12 + $0xc8] ss:$16 sps:$4 sm:$0xff]   ;;  %v4392_v50 = vld [vmem:[#allocation13 + $0x184] ss:$16 sps:$4 sm:$0xff]   ;;  %v621_v57 = vmul.f32 %v5155_v33, %v557_v53 }
 0x16e   : > { %2559 = vmatprep.subr.bf16.mxu0 %v4350_v54  ;;  %v639_v38 = vpack.c.bf16 %v609_v27, %v606_v26  ;;  %v4390_v54 = vld [vmem:[#allocation13 + $0x180] ss:$16 sps:$4 sm:$0xff]   ;;  %v4425_v26 = vld [vmem:[#allocation7 + $0x2c] ss:$16 sps:$4 sm:$0xff]  }
 0x170   : > { %2673 = vmatpush1.bf16.msra.mxu1 %v4351_v39  ;;  %v548_v39 = vunpack.c.l.bf16 %v503_v29 }
 0x171   : > { %2674 = vmatprep.subr.bf16.mxu1 %v4359_v40  ;;  %2560 = vmatpush1.bf16.msra.mxu0 %v4348_v58  ;;  %v551_v40 = vunpack.c.h.bf16 %v503_v29  ;;  %v4423_v29 = vld [vmem:[#allocation7 + $0x28] ss:$16 sps:$4 sm:$0xff]  }
 0x172   : > { %2561 = vmatprep.subr.bf16.mxu0 %v4356_v62  ;;  %1110 = vmatmul.mubr.bf16.gmra.mrb[12].mxu0 %v633_v2  ;;  %v612_v45 = vmul.f32 %v5155_v33, %v548_v39  ;;  %v4405_v62 = vld [vmem:[#allocation13 + $0x1c8] ss:$16 sps:$4 sm:$0xff]   ;;  %v4419_v2 = vld [vmem:[#allocation7 + $0xc] ss:$16 sps:$4 sm:$0xff]  }
 0x173   : > { %1944 = vmatmul.mubr.bf16.gmra.mrb[12].mxu1 %v4305_v42  ;;  %1119 = vmatprep.mubr.bf16.mxu0 %v4802_v9  ;;  %v4378_v42 = vld [vmem:[#allocation13 + $0x140] ss:$16 sps:$4 sm:$0xff]  }
 0x174   : > { %1953 = vmatprep.mubr.bf16.mxu1 %v4306_v46  ;;  %2675 = vmatpush1.bf16.msra.mxu1 %v4357_v48  ;;  %v615_v46 = vmul.f32 %v5155_v33, %v551_v40  ;;  %v4317_v48 = vld [vmem:[%s5110_s12 + $0xe8] ss:$16 sps:$4 sm:$0xff]  }
 0x175   : > { %2676 = vmatprep.subr.bf16.mxu1 %v4365_v49  ;;  %2562 = vmatpush1.bf16.msra.mxu0 %v4354_v1  ;;  %v4384_v49 = vld [vmem:[#allocation13 + $0x160] ss:$16 sps:$4 sm:$0xff]  }
 0x176   : > { %2563 = vmatprep.subr.bf16.mxu0 %v4362_v4  ;;  %v642_v51 = vpack.c.bf16 %v615_v46, %v612_v45  ;;  %v4408_v1 = vld [vmem:[#allocation13 + $0x1e0] ss:$16 sps:$4 sm:$0xff]   ;;  %v4515_v4 = vpop.eup %4514 }
 0x178   : > { %2677 = vmatpush1.bf16.msra.mxu1 %v4363_v55  ;;  %v4398_v55 = vld [vmem:[#allocation13 + $0x1a4] ss:$16 sps:$4 sm:$0xff]  }
 0x179   : > { %2678 = vmatprep.subr.bf16.mxu1 %v4371_v56  ;;  %2564 = vmatpush1.bf16.msra.mxu0 %v4360_v13  ;;  %v618_v56 = vmul.f32 %v5155_v33, %v554_v52  ;;  %v4411_v33 = vld [vmem:[#allocation13 + $0x1e8] ss:$16 sps:$4 sm:$0xff]  }
 0x17a   : > { %2565 = vmatprep.subr.bf16.mxu0 %v4368_v16  ;;  %1120 = vmatmul.mubr.bf16.gmra.mrb[16].mxu0 %v636_v19 }
 0x17b   : > { %1954 = vmatmul.mubr.bf16.gmra.mrb[16].mxu1 %v4308_v32  ;;  %1129 = vmatprep.mubr.bf16.mxu0 %v4802_v9  ;;  %v4396_v32 = vld [vmem:[#allocation13 + $0x1a0] ss:$16 sps:$4 sm:$0xff]   ;;  %v645_v58 = vpack.c.bf16 %v621_v57, %v618_v56  ;;  %v4435_v56 = vld [vmem:[#allocation7 + $0x68] ss:$16 sps:$4 sm:$0xff]  }
 0x17c   : > { %1963 = vmatprep.mubr.bf16.mxu1 %v4309_v61  ;;  %2679 = vmatpush1.bf16.msra.mxu1 %v4369_v63  ;;  %v4402_v61 = vld [vmem:[#allocation13 + $0x1c0] ss:$16 sps:$4 sm:$0xff]   ;;  %v4410_v63 = vld [vmem:[#allocation13 + $0x1e4] ss:$16 sps:$4 sm:$0xff]  }
 0x17d   : > { %2680 = vmatprep.subr.bf16.mxu1 %v4377_v0  ;;  %2566 = vmatpush1.bf16.msra.mxu0 %v4366_v23  ;;  %v4413_v0 = vld [vmem:[#allocation13 + $0x1ec] ss:$16 sps:$4 sm:$0xff]  }
 0x17e   : > { %2567 = vmatprep.subr.bf16.mxu0 %v4374_v24  ;;  %v4417_v24 = vld [vmem:[#allocation7 + $0x8] ss:$16 sps:$4 sm:$0xff]  }
 0x180   : > { %2681 = vmatpush1.bf16.msra.mxu1 %v4375_v5  ;;  %v474_v5 = vadd.f32 1.0, %v4515_v4  ;;  %v4441_v4 = vld [vmem:[#allocation7 + $0x88] ss:$16 sps:$4 sm:$0xff]  }
 0x181   : > { %2682 = vmatprep.subr.bf16.mxu1 %v4383_v10  ;;  %2568 = vmatpush1.bf16.msra.mxu0 %v4372_v31 }
 0x182   : > { %2569 = vmatprep.subr.bf16.mxu0 %v4380_v36  ;;  %1130 = vmatmul.mubr.bf16.gmra.mrb[20].mxu0 %v639_v38  ;;  %4516 = vrcp.f32 %v474_v5  ;;  %v4431_v38 = vld [vmem:[#allocation7 + $0x4c] ss:$16 sps:$4 sm:$0xff]  }
 0x183   : > { %1964 = vmatmul.mubr.bf16.gmra.mrb[20].mxu1 %v4311_v12  ;;  %1139 = vmatprep.mubr.bf16.mxu0 %v4802_v9 }
 0x184   : > { %1973 = vmatprep.mubr.bf16.mxu1 %v4312_v14  ;;  %2683 = vmatpush1.bf16.msra.mxu1 %v4381_v18 }
 0x185   : > { %2684 = vmatprep.subr.bf16.mxu1 %v4389_v22  ;;  %2570 = vmatpush1.bf16.msra.mxu0 %v4378_v42 }
 0x186   : > { %2571 = vmatprep.subr.bf16.mxu0 %v4386_v43 }
 0x188   : > { %2685 = vmatpush1.bf16.msra.mxu1 %v4387_v25  ;;  %v4422_v25 = vld [vmem:[#allocation7 + $0x24] ss:$16 sps:$4 sm:$0xff]  }
 0x189   : > { %2686 = vmatprep.subr.bf16.mxu1 %v4395_v28  ;;  %2572 = vmatpush1.bf16.msra.mxu0 %v4384_v49  ;;  %v4420_v28 = vld [vmem:[#allocation7 + $0x20] ss:$16 sps:$4 sm:$0xff]  }
 0x18a   : > { %2573 = vmatprep.subr.bf16.mxu0 %v4392_v50  ;;  %1140 = vmatmul.mubr.bf16.gmra.mrb[24].mxu0 %v642_v51  ;;  %v4434_v50 = vld [vmem:[#allocation7 + $0x64] ss:$16 sps:$4 sm:$0xff]   ;;  %v4437_v51 = vld [vmem:[#allocation7 + $0x6c] ss:$16 sps:$4 sm:$0xff]  }
 0x18b   : > { %1974 = vmatmul.mubr.bf16.gmra.mrb[24].mxu1 %v4314_v30  ;;  %1149 = vmatprep.mubr.bf16.mxu0 %v4802_v9  ;;  %v4416_v9 = vld [vmem:[#allocation7 + $0x4] ss:$16 sps:$4 sm:$0xff]  }
 0x18c   : > { %1983 = vmatprep.mubr.bf16.mxu1 %v4315_v35  ;;  %2687 = vmatpush1.bf16.msra.mxu1 %v4393_v37  ;;  %v4517_v6 = vpop.eup %4516  ;;  %v4428_v37 = vld [vmem:[#allocation7 + $0x44] ss:$16 sps:$4 sm:$0xff]  }
 0x18d   : > { %2688 = vmatprep.subr.bf16.mxu1 %v4401_v41  ;;  %2574 = vmatpush1.bf16.msra.mxu0 %v4390_v54  ;;  %v477_v7 = vmul.f32 0.33333334, %v4517_v6  ;;  %v4446_v6 = vld [vmem:[#allocation7 + $0xa4] ss:$16 sps:$4 sm:$0xff]  }
 0x18e   : > { %2575 = vmatprep.subr.bf16.mxu0 %v4398_v55  ;;  %v4432_v55 = vld [vmem:[#allocation7 + $0x60] ss:$16 sps:$4 sm:$0xff]  }
 0x18f   : > { %v5282_v10 = vrot.slane %v477_v7, %v561_v17  ;;  %v5286_v12 = vrot.slane %v477_v7, %v565_v15  ;;  %v4414_v17 = vld [vmem:[#allocation7] ss:$16 sps:$4 sm:$0xff]   ;;  %v4449_v7 = vld [vmem:[#allocation7 + $0xac] ss:$16 sps:$4 sm:$0xff]  }
 0x190   : > { %2689 = vmatpush1.bf16.msra.mxu1 %v4399_v44 }
 0x191   : > { %2576 = vmatpush1.bf16.msra.mxu0 %v4396_v32  ;;  %2690 = vmatprep.subr.bf16.mxu1 %v4407_v60  ;;  %v4440_v60 = vld [vmem:[#allocation7 + $0x84] ss:$16 sps:$4 sm:$0xff]  }
 0x192   : > { %1150 = vmatmul.mubr.bf16.gmra.mrb[28].mxu0 %v645_v58  ;;  %2577 = vmatprep.subr.bf16.mxu0 %v4404_v59 }
 0x193   : > { %1984 = vmatmul.mubr.bf16.gmra.mrb[28].mxu1 %v4317_v48  ;;  %v4429_v48 = vld [vmem:[#allocation7 + $0x48] ss:$16 sps:$4 sm:$0xff]  }
 0x194   : > { %2691 = vmatpush1.bf16.msra.mxu1 %v4405_v62 }
 0x195   : > { %2578 = vmatpush1.bf16.msra.mxu0 %v4402_v61  ;;  %2692 = vmatprep.subr.bf16.mxu1 %v4413_v0  ;;  %v4443_v61 = vld [vmem:[#allocation7 + $0x8c] ss:$16 sps:$4 sm:$0xff]  }
 0x196   : > { %2579 = vmatprep.subr.bf16.mxu0 %v4410_v63 }
 0x198   : > { %2693 = vmatpush1.bf16.msra.mxu1 %v4411_v33 }
 0x199   : > { %2580 = vmatpush1.bf16.msra.mxu0 %v4408_v1  ;;  %3208 = vmatprep.subr.bf16.mxu1 %v4419_v2 }
 0x19a   : > { %3095 = vmatprep.subr.bf16.mxu0 %v4416_v9 }
 0x22d   : > { %v1081_v30 = vpop.f32.mrb[0].mxu0 }
 0x22e   : > { %v1915_v11 = vpop.f32.mrb[0].mxu1  ;;  %v1083_v39 = vpop.f32.mrb[1].mxu0 }
 0x22f   : > { %v1917_v13 = vpop.f32.mrb[1].mxu1  ;;  %v2005_v16 = vmul.f32 %v5282_v10, %v1915_v11  ;;  %v1085_v42 = vpop.f32.mrb[2].mxu0 }
 0x230   : > { %v1919_v14 = vpop.f32.mrb[2].mxu1  ;;  %v2006_v20 = vmul.f32 %v5286_v12, %v1917_v13  ;;  %v5296_v44 = vpack.c.bf16 %v1085_v42, %v1081_v30  ;;  %v1087_v45 = vpop.f32.mrb[3].mxu0  ;;  %v4450_v30 = vld [vmem:[#allocation7 + $0xc0] ss:$16 sps:$4 sm:$0xff]   ;;  %v4459_v42 = vld [vmem:[#allocation7 + $0xe8] ss:$16 sps:$4 sm:$0xff]  }
 0x231   : > { %v2007_v18 = vmul.f32 %v5282_v10, %v1919_v14  ;;  %v1921_v19 = vpop.f32.mrb[3].mxu1  ;;  %v5298_v49 = vpack.c.bf16 %v1087_v45, %v1083_v39 }
 0x232   : > { %v2008_v21 = vmul.f32 %v5286_v12, %v1921_v19 }
 0x233   : > { %v2037_v22 = vpack.c.bf16 %v2007_v18, %v2005_v16  ;;  %v4444_v16 = vld [vmem:[#allocation7 + $0xa0] ss:$16 sps:$4 sm:$0xff]   ;;  %v4447_v18 = vld [vmem:[#allocation7 + $0xa8] ss:$16 sps:$4 sm:$0xff]  }
 0x234   : > { %v2038_v23 = vpack.c.bf16 %v2008_v21, %v2006_v20 }
 0x235   : > { %v1091_v57 = vpop.f32.mrb[4].mxu0 }
 0x236   : > { %v1925_v8 = vpop.f32.mrb[4].mxu1  ;;  %2581 = vmatprep.mubr.bf16.mxu0 %v2038_v23  ;;  %2694 = vmatprep.mubr.bf16.mxu1 %v2038_v23  ;;  %v1093_v62 = vpop.f32.mrb[5].mxu0  ;;  %v4452_v23 = vld [vmem:[#allocation7 + $0xc4] ss:$16 sps:$4 sm:$0xff]  }
 0x237   : > { %v1927_v15 = vpop.f32.mrb[5].mxu1  ;;  %2582 = vmatmul.mubr.bf16.vlgmr.msra.gmra.mrb[32].mxu0 %v2037_v22  ;;  %2695 = vmatmul.mubr.bf16.vlgmr.msra.gmra.mrb[32].mxu1 %v2037_v22  ;;  %v2009_v31 = vmul.f32 %v5282_v10, %v1925_v8  ;;  %v1095_v1 = vpop.f32.mrb[6].mxu0 }
 0x238   : > { %v1929_v27 = vpop.f32.mrb[6].mxu1  ;;  %3096 = vmatpush1.bf16.msra.mxu0 %v4414_v17  ;;  %3209 = vmatpush1.bf16.msra.mxu1 %v4417_v24  ;;  %v2010_v40 = vmul.f32 %v5286_v12, %v1927_v15  ;;  %v5304_v9 = vpack.c.bf16 %v1095_v1, %v1091_v57  ;;  %v1097_v2 = vpop.f32.mrb[7].mxu0  ;;  %v4455_v17 = vld [vmem:[#allocation7 + $0xcc] ss:$16 sps:$4 sm:$0xff]  }
 0x239   : > { %v2011_v35 = vmul.f32 %v5282_v10, %v1929_v27  ;;  %v1931_v36 = vpop.f32.mrb[7].mxu1  ;;  %3097 = vmatprep.subr.bf16.mxu0 %v4422_v25  ;;  %3210 = vmatprep.subr.bf16.mxu1 %v4425_v26  ;;  %v5306_v5 = vpack.c.bf16 %v1097_v2, %v1093_v62  ;;  %v4473_v62 = vld [vmem:[#allocation7 + $0x12c] ss:$16 sps:$4 sm:$0xff]   ;;  %v4471_v2 = vld [vmem:[#allocation7 + $0x128] ss:$16 sps:$4 sm:$0xff]  }
 0x23a   : > { %v2012_v41 = vmul.f32 %v5286_v12, %v1931_v36  ;;  %v4458_v36 = vld [vmem:[#allocation7 + $0xe4] ss:$16 sps:$4 sm:$0xff]  }
 0x23b   : > { %v2039_v43 = vpack.c.bf16 %v2011_v35, %v2009_v31  ;;  %v4453_v31 = vld [vmem:[#allocation7 + $0xc8] ss:$16 sps:$4 sm:$0xff]  }
 0x23c   : > { %v2040_v46 = vpack.c.bf16 %v2012_v41, %v2010_v40  ;;  %3098 = vmatpush1.bf16.msra.mxu0 %v4420_v28  ;;  %3211 = vmatpush1.bf16.msra.mxu1 %v4423_v29  ;;  %v4456_v41 = vld [vmem:[#allocation7 + $0xe0] ss:$16 sps:$4 sm:$0xff]  }
 0x23d   : > { %3099 = vmatprep.subr.bf16.mxu0 %v4428_v37  ;;  %3212 = vmatprep.subr.bf16.mxu1 %v4431_v38  ;;  %v1101_v19 = vpop.f32.mrb[8].mxu0  ;;  %v4461_v37 = vld [vmem:[#allocation7 + $0xec] ss:$16 sps:$4 sm:$0xff]  }
 0x23e   : > { %v1935_v52 = vpop.f32.mrb[8].mxu1  ;;  %2591 = vmatprep.mubr.bf16.mxu0 %v2040_v46  ;;  %2704 = vmatprep.mubr.bf16.mxu1 %v2040_v46  ;;  %v1103_v24 = vpop.f32.mrb[9].mxu0 }
 0x23f   : > { %v1937_v53 = vpop.f32.mrb[9].mxu1  ;;  %2592 = vmatmul.mubr.bf16.gmra.mrb[36].mxu0 %v2039_v43  ;;  %2705 = vmatmul.mubr.bf16.gmra.mrb[36].mxu1 %v2039_v43  ;;  %v2013_v32 = vmul.f32 %v5282_v10, %v1935_v52  ;;  %v1105_v8 = vpop.f32.mrb[10].mxu0 }
 0x240   : > { %v1939_v54 = vpop.f32.mrb[10].mxu1  ;;  %3100 = vmatpush1.bf16.msra.mxu0 %v4426_v47  ;;  %3213 = vmatpush1.bf16.msra.mxu1 %v4429_v48  ;;  %v2014_v63 = vmul.f32 %v5286_v12, %v1937_v53  ;;  %v5312_v27 = vpack.c.bf16 %v1105_v8, %v1101_v19  ;;  %v1107_v28 = vpop.f32.mrb[11].mxu0  ;;  %v4464_v48 = vld [vmem:[#allocation7 + $0x104] ss:$16 sps:$4 sm:$0xff]  }
 0x241   : > { %v2015_v58 = vmul.f32 %v5282_v10, %v1939_v54  ;;  %v1941_v59 = vpop.f32.mrb[11].mxu1  ;;  %3101 = vmatprep.subr.bf16.mxu0 %v4434_v50  ;;  %3214 = vmatprep.subr.bf16.mxu1 %v4437_v51  ;;  %v5314_v35 = vpack.c.bf16 %v1107_v28, %v1103_v24  ;;  %v4467_v50 = vld [vmem:[#allocation7 + $0x10c] ss:$16 sps:$4 sm:$0xff]  }
 0x242   : > { %v2016_v0 = vmul.f32 %v5286_v12, %v1941_v59  ;;  %v4465_v59 = vld [vmem:[#allocation7 + $0x108] ss:$16 sps:$4 sm:$0xff]  }
 0x243   : > { %v2041_v33 = vpack.c.bf16 %v2015_v58, %v2013_v32  ;;  %v4462_v58 = vld [vmem:[#allocation7 + $0x100] ss:$16 sps:$4 sm:$0xff]  }
 0x244   : > { %v2042_v3 = vpack.c.bf16 %v2016_v0, %v2014_v63  ;;  %3102 = vmatpush1.bf16.msra.mxu0 %v4432_v55  ;;  %3215 = vmatpush1.bf16.msra.mxu1 %v4435_v56 }
 0x245   : > { %3103 = vmatprep.subr.bf16.mxu0 %v4440_v60  ;;  %3216 = vmatprep.subr.bf16.mxu1 %v4443_v61  ;;  %v1111_v43 = vpop.f32.mrb[12].mxu0  ;;  %v4470_v61 = vld [vmem:[#allocation7 + $0x124] ss:$16 sps:$4 sm:$0xff]  }
 0x246   : > { %v1945_v11 = vpop.f32.mrb[12].mxu1  ;;  %2601 = vmatprep.mubr.bf16.mxu0 %v2042_v3  ;;  %2714 = vmatprep.mubr.bf16.mxu1 %v2042_v3  ;;  %v1113_v51 = vpop.f32.mrb[13].mxu0 }
 0x247   : > { %v1947_v13 = vpop.f32.mrb[13].mxu1  ;;  %2602 = vmatmul.mubr.bf16.gmra.mrb[40].mxu0 %v2041_v33  ;;  %2715 = vmatmul.mubr.bf16.gmra.mrb[40].mxu1 %v2041_v33  ;;  %v2017_v20 = vmul.f32 %v5282_v10, %v1945_v11  ;;  %v1115_v54 = vpop.f32.mrb[14].mxu0  ;;  %v4468_v33 = vld [vmem:[#allocation7 + $0x120] ss:$16 sps:$4 sm:$0xff]   ;;  %v4479_v11 = vld [vmem:[#allocation7 + $0x14c] ss:$16 sps:$4 sm:$0xff]  }
 0x248   : > { %v1949_v14 = vpop.f32.mrb[14].mxu1  ;;  %3104 = vmatpush1.bf16.msra.mxu0 %v4438_v34  ;;  %3217 = vmatpush1.bf16.msra.mxu1 %v4441_v4  ;;  %v2018_v25 = vmul.f32 %v5286_v12, %v1947_v13  ;;  %v5320_v56 = vpack.c.bf16 %v1115_v54, %v1111_v43  ;;  %v1117_v57 = vpop.f32.mrb[15].mxu0  ;;  %v4494_v54 = vld [vmem:[#allocation7 + $0x1a4] ss:$16 sps:$4 sm:$0xff]  }
 0x249   : > { %v2019_v21 = vmul.f32 %v5282_v10, %v1949_v14  ;;  %v1951_v22 = vpop.f32.mrb[15].mxu1  ;;  %3105 = vmatprep.subr.bf16.mxu0 %v4446_v6  ;;  %3218 = vmatprep.subr.bf16.mxu1 %v4449_v7  ;;  %v5322_v60 = vpack.c.bf16 %v1117_v57, %v1113_v51  ;;  %v4476_v7 = vld [vmem:[#allocation7 + $0x144] ss:$16 sps:$4 sm:$0xff]   ;;  %v4486_v51 = vld [vmem:[#allocation7 + $0x180] ss:$16 sps:$4 sm:$0xff]  }
 0x24a   : > { %v2020_v26 = vmul.f32 %v5286_v12, %v1951_v22 }
 0x24b   : > { %v2043_v15 = vpack.c.bf16 %v2019_v21, %v2017_v20 }
 0x24c   : > { %v2044_v29 = vpack.c.bf16 %v2020_v26, %v2018_v25  ;;  %3106 = vmatpush1.bf16.msra.mxu0 %v4444_v16  ;;  %3219 = vmatpush1.bf16.msra.mxu1 %v4447_v18  ;;  %v4482_v25 = vld [vmem:[#allocation7 + $0x164] ss:$16 sps:$4 sm:$0xff]   ;;  %v4485_v26 = vld [vmem:[#allocation7 + $0x16c] ss:$16 sps:$4 sm:$0xff]  }
 0x24d   : > { %3107 = vmatprep.subr.bf16.mxu0 %v4452_v23  ;;  %3220 = vmatprep.subr.bf16.mxu1 %v4455_v17  ;;  %v1121_v3 = vpop.f32.mrb[16].mxu0  ;;  %v4474_v23 = vld [vmem:[#allocation7 + $0x140] ss:$16 sps:$4 sm:$0xff]   ;;  %v4477_v17 = vld [vmem:[#allocation7 + $0x148] ss:$16 sps:$4 sm:$0xff]  }
 0x24e   : > { %v1955_v38 = vpop.f32.mrb[16].mxu1  ;;  %2611 = vmatprep.mubr.bf16.mxu0 %v2044_v29  ;;  %2724 = vmatprep.mubr.bf16.mxu1 %v2044_v29  ;;  %v1123_v13 = vpop.f32.mrb[17].mxu0  ;;  %v4480_v29 = vld [vmem:[#allocation7 + $0x160] ss:$16 sps:$4 sm:$0xff]  }
 0x24f   : > { %v1957_v39 = vpop.f32.mrb[17].mxu1  ;;  %2612 = vmatmul.mubr.bf16.gmra.mrb[44].mxu0 %v2043_v15  ;;  %2725 = vmatmul.mubr.bf16.gmra.mrb[44].mxu1 %v2043_v15  ;;  %v2021_v45 = vmul.f32 %v5282_v10, %v1955_v38  ;;  %v1125_v18 = vpop.f32.mrb[18].mxu0 }
 0x250   : > { %v1959_v40 = vpop.f32.mrb[18].mxu1  ;;  %3108 = vmatpush1.bf16.msra.mxu0 %v4450_v30  ;;  %3221 = vmatpush1.bf16.msra.mxu1 %v4453_v31  ;;  %v2022_v52 = vmul.f32 %v5286_v12, %v1957_v39  ;;  %v5328_v20 = vpack.c.bf16 %v1125_v18, %v1121_v3  ;;  %v1127_v21 = vpop.f32.mrb[19].mxu0  ;;  %v4483_v30 = vld [vmem:[#allocation7 + $0x168] ss:$16 sps:$4 sm:$0xff]   ;;  %v4488_v39 = vld [vmem:[#allocation7 + $0x184] ss:$16 sps:$4 sm:$0xff]  }
 0x251   : > { %v2023_v46 = vmul.f32 %v5282_v10, %v1959_v40  ;;  %v1961_v47 = vpop.f32.mrb[19].mxu1  ;;  %3109 = vmatprep.subr.bf16.mxu0 %v4458_v36  ;;  %3222 = vmatprep.subr.bf16.mxu1 %v4461_v37  ;;  %v5330_v24 = vpack.c.bf16 %v1127_v21, %v1123_v13  ;;  %v4491_v40 = vld [vmem:[#allocation7 + $0x18c] ss:$16 sps:$4 sm:$0xff]  }
 0x252   : > { %v2024_v53 = vmul.f32 %v5286_v12, %v1961_v47  ;;  %v4509_v21 = vld [vmem:[#allocation7 + $0x1ec] ss:$16 sps:$4 sm:$0xff]  }
 0x253   : > { %v2045_v55 = vpack.c.bf16 %v2023_v46, %v2021_v45 }
 0x254   : > { %v2046_v32 = vpack.c.bf16 %v2024_v53, %v2022_v52  ;;  %3110 = vmatpush1.bf16.msra.mxu0 %v4456_v41  ;;  %3223 = vmatpush1.bf16.msra.mxu1 %v4459_v42  ;;  %v4489_v52 = vld [vmem:[#allocation7 + $0x188] ss:$16 sps:$4 sm:$0xff]  }
 0x255   : > { %3111 = vmatprep.subr.bf16.mxu0 %v4464_v48  ;;  %3224 = vmatprep.subr.bf16.mxu1 %v4467_v50  ;;  %v1131_v31 = vpop.f32.mrb[20].mxu0 }
 0x256   : > { %v1965_v63 = vpop.f32.mrb[20].mxu1  ;;  %2621 = vmatprep.mubr.bf16.mxu0 %v2046_v32  ;;  %2734 = vmatprep.mubr.bf16.mxu1 %v2046_v32  ;;  %v1133_v41 = vpop.f32.mrb[21].mxu0 }
 0x257   : > { %v1967_v0 = vpop.f32.mrb[21].mxu1  ;;  %2622 = vmatmul.mubr.bf16.gmra.mrb[48].mxu0 %v2045_v55  ;;  %2735 = vmatmul.mubr.bf16.gmra.mrb[48].mxu1 %v2045_v55  ;;  %v2025_v34 = vmul.f32 %v5282_v10, %v1965_v63  ;;  %v1135_v45 = vpop.f32.mrb[22].mxu0  ;;  %v4497_v55 = vld [vmem:[#allocation7 + $0x1ac] ss:$16 sps:$4 sm:$0xff]  }
 0x258   : > { %v1969_v1 = vpop.f32.mrb[22].mxu1  ;;  %3112 = vmatpush1.bf16.msra.mxu0 %v4462_v58  ;;  %3225 = vmatpush1.bf16.msra.mxu1 %v4465_v59  ;;  %v2026_v14 = vmul.f32 %v5286_v12, %v1967_v0  ;;  %v5336_v47 = vpack.c.bf16 %v1135_v45, %v1131_v31  ;;  %v1137_v48 = vpop.f32.mrb[23].mxu0  ;;  %v4492_v59 = vld [vmem:[#allocation7 + $0x1a0] ss:$16 sps:$4 sm:$0xff]  }
 0x259   : > { %v2027_v4 = vmul.f32 %v5282_v10, %v1969_v1  ;;  %v1971_v6 = vpop.f32.mrb[23].mxu1  ;;  %3113 = vmatprep.subr.bf16.mxu0 %v4470_v61  ;;  %3226 = vmatprep.subr.bf16.mxu1 %v4473_v62  ;;  %v5338_v53 = vpack.c.bf16 %v1137_v48, %v1133_v41  ;;  %v4495_v61 = vld [vmem:[#allocation7 + $0x1a8] ss:$16 sps:$4 sm:$0xff]  }
 0x25a   : > { %v2028_v16 = vmul.f32 %v5286_v12, %v1971_v6 }
 0x25b   : > { %v2047_v19 = vpack.c.bf16 %v2027_v4, %v2025_v34 }
 0x25c   : > { %v2048_v22 = vpack.c.bf16 %v2028_v16, %v2026_v14  ;;  %3114 = vmatpush1.bf16.msra.mxu0 %v4468_v33  ;;  %3227 = vmatpush1.bf16.msra.mxu1 %v4471_v2  ;;  %v4500_v33 = vld [vmem:[#allocation7 + $0x1c4] ss:$16 sps:$4 sm:$0xff]   ;;  %v4503_v2 = vld [vmem:[#allocation7 + $0x1cc] ss:$16 sps:$4 sm:$0xff]   ;;  %v4498_v16 = vld [vmem:[#allocation7 + $0x1c0] ss:$16 sps:$4 sm:$0xff]  }
 0x25d   : > { %3115 = vmatprep.subr.bf16.mxu0 %v4476_v7  ;;  %3228 = vmatprep.subr.bf16.mxu1 %v4479_v11  ;;  %v1141_v62 = vpop.f32.mrb[24].mxu0 }
 0x25e   : > { %v1975_v8 = vpop.f32.mrb[24].mxu1  ;;  %2631 = vmatprep.mubr.bf16.mxu0 %v2048_v22  ;;  %2744 = vmatprep.mubr.bf16.mxu1 %v2048_v22  ;;  %v1143_v3 = vpop.f32.mrb[25].mxu0 }
 0x25f   : > { %v1977_v15 = vpop.f32.mrb[25].mxu1  ;;  %2632 = vmatmul.mubr.bf16.gmra.mrb[52].mxu0 %v2047_v19  ;;  %2745 = vmatmul.mubr.bf16.gmra.mrb[52].mxu1 %v2047_v19  ;;  %v2029_v36 = vmul.f32 %v5282_v10, %v1975_v8  ;;  %v1145_v6 = vpop.f32.mrb[26].mxu0  ;;  %v4506_v19 = vld [vmem:[#allocation7 + $0x1e4] ss:$16 sps:$4 sm:$0xff]  }
 0x260   : > { %v1979_v28 = vpop.f32.mrb[26].mxu1  ;;  %3116 = vmatpush1.bf16.msra.mxu0 %v4474_v23  ;;  %3229 = vmatpush1.bf16.msra.mxu1 %v4477_v17  ;;  %v2030_v42 = vmul.f32 %v5286_v12, %v1977_v15  ;;  %v1172_v11 = vpack.c.bf16 %v1145_v6, %v1141_v62  ;;  %v1147_v13 = vpop.f32.mrb[27].mxu0  ;;  %v4507_v23 = vld [vmem:[#allocation7 + $0x1e8] ss:$16 sps:$4 sm:$0xff]  }
 0x261   : > { %v2031_v37 = vmul.f32 %v5282_v10, %v1979_v28  ;;  %v1981_v38 = vpop.f32.mrb[27].mxu1  ;;  %3117 = vmatprep.subr.bf16.mxu0 %v4482_v25  ;;  %3230 = vmatprep.subr.bf16.mxu1 %v4485_v26  ;;  %v1173_v18 = vpack.c.bf16 %v1147_v13, %v1143_v3 }
 0x262   : > { %v2032_v43 = vmul.f32 %v5286_v12, %v1981_v38 }
 0x263   : > { %v2049_v46 = vpack.c.bf16 %v2031_v37, %v2029_v36 }
 0x264   : > { %v2050_v50 = vpack.c.bf16 %v2032_v43, %v2030_v42  ;;  %3118 = vmatpush1.bf16.msra.mxu0 %v4480_v29  ;;  %3231 = vmatpush1.bf16.msra.mxu1 %v4483_v30 }
 0x265   : > { %3119 = vmatprep.subr.bf16.mxu0 %v4488_v39  ;;  %3232 = vmatprep.subr.bf16.mxu1 %v4491_v40  ;;  %v1151_v22 = vpop.f32.mrb[28].mxu0 }
 0x266   : > { %v1985_v57 = vpop.f32.mrb[28].mxu1  ;;  %2641 = vmatprep.mubr.bf16.mxu0 %v2050_v50  ;;  %2754 = vmatprep.mubr.bf16.mxu1 %v2050_v50  ;;  %v1153_v17 = vpop.f32.mrb[29].mxu0 }
 0x267   : > { %v1987_v32 = vpop.f32.mrb[29].mxu1  ;;  %2642 = vmatmul.mubr.bf16.gmra.mrb[56].mxu0 %v2049_v46  ;;  %2755 = vmatmul.mubr.bf16.gmra.mrb[56].mxu1 %v2049_v46  ;;  %v2033_v63 = vmul.f32 %v5282_v10, %v1985_v57  ;;  %v1155_v25 = vpop.f32.mrb[30].mxu0 }
 0x268   : > { %v1989_v58 = vpop.f32.mrb[30].mxu1  ;;  %3120 = vmatpush1.bf16.msra.mxu0 %v4486_v51  ;;  %3233 = vmatpush1.bf16.msra.mxu1 %v4489_v52  ;;  %v2034_v34 = vmul.f32 %v5286_v12, %v1987_v32  ;;  %v1174_v26 = vpack.c.bf16 %v1155_v25, %v1151_v22  ;;  %v1157_v8 = vpop.f32.mrb[31].mxu0 }
 0x269   : > { %v2035_v0 = vmul.f32 %v5282_v10, %v1989_v58  ;;  %v1991_v1 = vpop.f32.mrb[31].mxu1  ;;  %3121 = vmatprep.subr.bf16.mxu0 %v4494_v54  ;;  %3234 = vmatprep.subr.bf16.mxu1 %v4497_v55  ;;  %v4501_v10 = vld [vmem:[#allocation7 + $0x1c8] ss:$16 sps:$4 sm:$0xff]   ;;  %v1175_v15 = vpack.c.bf16 %v1157_v8, %v1153_v17 }
 0x26a   : > { %v2036_v4 = vmul.f32 %v5286_v12, %v1991_v1  ;;  %v4504_v12 = vld [vmem:[#allocation7 + $0x1e0] ss:$16 sps:$4 sm:$0xff]  }
 0x26b   : > { %v2051_v7 = vpack.c.bf16 %v2035_v0, %v2033_v63 }
 0x26c   : > { %v2052_v14 = vpack.c.bf16 %v2036_v4, %v2034_v34  ;;  %3122 = vmatpush1.bf16.msra.mxu0 %v4492_v59  ;;  %3235 = vmatpush1.bf16.msra.mxu1 %v4495_v61 }
 0x26d   : > { %3123 = vmatprep.subr.bf16.mxu0 %v4500_v33  ;;  %3236 = vmatprep.subr.bf16.mxu1 %v4503_v2 }
 0x26e   : > { %2651 = vmatprep.mubr.bf16.mxu0 %v2052_v14  ;;  %2764 = vmatprep.mubr.bf16.mxu1 %v2052_v14 }
 0x26f   : > { %2652 = vmatmul.mubr.bf16.gmra.mrb[60].mxu0 %v2051_v7  ;;  %2765 = vmatmul.mubr.bf16.gmra.mrb[60].mxu1 %v2051_v7 }
 0x270   : > { %3124 = vmatpush1.bf16.msra.mxu0 %v4498_v16  ;;  %3127 = vmatprep.mubr.bf16.mxu0 %v5298_v49 }
 0x271   : > { %3237 = vmatpush1.bf16.msra.mxu1 %v4501_v10  ;;  %3240 = vmatprep.mubr.bf16.mxu1 %v5298_v49 }
 0x272   : > { %3125 = vmatprep.subr.bf16.mxu0 %v4506_v19  ;;  %3238 = vmatprep.subr.bf16.mxu1 %v4509_v21 }
 0x274   : > { %3126 = vmatpush1.bf16.msra.mxu0 %v4504_v12 }
 0x275   : > { %3239 = vmatpush1.bf16.msra.mxu1 %v4507_v23 }
 0x277   : > { %3128 = vmatmul.mubr.bf16.vlgmr.msra.gmra.mrb[32].mxu0 %v5296_v44 }
 0x278   : > { %3241 = vmatmul.mubr.bf16.vlgmr.msra.gmra.mrb[32].mxu1 %v5296_v44  ;;  %3137 = vmatprep.mubr.bf16.mxu0 %v5306_v5 }
 0x279   : > { %3250 = vmatprep.mubr.bf16.mxu1 %v5306_v5 }
 0x27f   : > { %3138 = vmatmul.mubr.bf16.gmra.mrb[36].mxu0 %v5304_v9 }
 0x280   : > { %3251 = vmatmul.mubr.bf16.gmra.mrb[36].mxu1 %v5304_v9  ;;  %3147 = vmatprep.mubr.bf16.mxu0 %v5314_v35 }
 0x281   : > { %3260 = vmatprep.mubr.bf16.mxu1 %v5314_v35 }
 0x287   : > { %3148 = vmatmul.mubr.bf16.gmra.mrb[40].mxu0 %v5312_v27 }
 0x288   : > { %3261 = vmatmul.mubr.bf16.gmra.mrb[40].mxu1 %v5312_v27  ;;  %3157 = vmatprep.mubr.bf16.mxu0 %v5322_v60 }
 0x289   : > { %3270 = vmatprep.mubr.bf16.mxu1 %v5322_v60 }
 0x28f   : > { %3158 = vmatmul.mubr.bf16.gmra.mrb[44].mxu0 %v5320_v56 }
 0x290   : > { %3271 = vmatmul.mubr.bf16.gmra.mrb[44].mxu1 %v5320_v56  ;;  %3167 = vmatprep.mubr.bf16.mxu0 %v5330_v24 }
 0x291   : > { %3280 = vmatprep.mubr.bf16.mxu1 %v5330_v24 }
 0x297   : > { %3168 = vmatmul.mubr.bf16.gmra.mrb[48].mxu0 %v5328_v20 }
 0x298   : > { %3281 = vmatmul.mubr.bf16.gmra.mrb[48].mxu1 %v5328_v20  ;;  %3177 = vmatprep.mubr.bf16.mxu0 %v5338_v53 }
 0x299   : > { %3290 = vmatprep.mubr.bf16.mxu1 %v5338_v53 }
 0x29f   : > { %3178 = vmatmul.mubr.bf16.gmra.mrb[52].mxu0 %v5336_v47 }
 0x2a0   : > { %3291 = vmatmul.mubr.bf16.gmra.mrb[52].mxu1 %v5336_v47  ;;  %3187 = vmatprep.mubr.bf16.mxu0 %v1173_v18 }
 0x2a1   : > { %3300 = vmatprep.mubr.bf16.mxu1 %v1173_v18 }
 0x2a7   : > { %3188 = vmatmul.mubr.bf16.gmra.mrb[56].mxu0 %v1172_v11 }
 0x2a8   : > { %3301 = vmatmul.mubr.bf16.gmra.mrb[56].mxu1 %v1172_v11  ;;  %3197 = vmatprep.mubr.bf16.mxu0 %v1175_v15 }
 0x2a9   : > { %3310 = vmatprep.mubr.bf16.mxu1 %v1175_v15 }
 0x2af   : > { %3198 = vmatmul.mubr.bf16.gmra.mrb[60].mxu0 %v1174_v26 }
 0x2b0   : > { %3311 = vmatmul.mubr.bf16.gmra.mrb[60].mxu1 %v1174_v26 }
 0x34a   : > { %v3129_v44 = vpop.f32.mrb[32].mxu0 }
 0x34b   : > { %3321 = vst [vmem:[%s5369_s17] sm:$0xff] %v3129_v44  ;;  %v3242_v49 = vpop.f32.mrb[32].mxu1  ;;  %v3131_v9 = vpop.f32.mrb[33].mxu0 }
 0x34c   : > { %3323 = vst [vmem:[%s5369_s17 + $0x10] sm:$0xff] %v3242_v49  ;;  %3322 = vst [vmem:[%s5369_s17 + $0x8] sm:$0xff] %v3131_v9  ;;  %v3244_v5 = vpop.f32.mrb[33].mxu1  ;;  %v3133_v27 = vpop.f32.mrb[34].mxu0 }
 0x34d   : > { %3324 = vst [vmem:[%s5369_s17 + $0x18] sm:$0xff] %v3244_v5  ;;  %3325 = vst [vmem:[%s5369_s17 + $0x20] sm:$0xff] %v3133_v27  ;;  %v3246_v35 = vpop.f32.mrb[34].mxu1  ;;  %v3135_v56 = vpop.f32.mrb[35].mxu0 }
 0x34e   : > { %3327 = vst [vmem:[%s5369_s17 + $0x30] sm:$0xff] %v3246_v35  ;;  %3326 = vst [vmem:[%s5369_s17 + $0x28] sm:$0xff] %v3135_v56  ;;  %v3248_v60 = vpop.f32.mrb[35].mxu1 }
 0x34f   : > { %3328 = vst [vmem:[%s5369_s17 + $0x38] sm:$0xff] %v3248_v60 }
 0x352   : > { %v3139_v20 = vpop.f32.mrb[36].mxu0 }
 0x353   : > { %3329 = vst [vmem:[%s5369_s17 + $0x40] sm:$0xff] %v3139_v20  ;;  %v3252_v24 = vpop.f32.mrb[36].mxu1  ;;  %v3141_v28 = vpop.f32.mrb[37].mxu0 }
 0x354   : > { %3331 = vst [vmem:[%s5369_s17 + $0x50] sm:$0xff] %v3252_v24  ;;  %3330 = vst [vmem:[%s5369_s17 + $0x48] sm:$0xff] %v3141_v28  ;;  %v3254_v29 = vpop.f32.mrb[37].mxu1  ;;  %v3143_v30 = vpop.f32.mrb[38].mxu0 }
 0x355   : > { %3332 = vst [vmem:[%s5369_s17 + $0x58] sm:$0xff] %v3254_v29  ;;  %3333 = vst [vmem:[%s5369_s17 + $0x60] sm:$0xff] %v3143_v30  ;;  %v3256_v31 = vpop.f32.mrb[38].mxu1  ;;  %v3145_v36 = vpop.f32.mrb[39].mxu0 }
 0x356   : > { %3335 = vst [vmem:[%s5369_s17 + $0x70] sm:$0xff] %v3256_v31  ;;  %3334 = vst [vmem:[%s5369_s17 + $0x68] sm:$0xff] %v3145_v36  ;;  %v3258_v37 = vpop.f32.mrb[39].mxu1 }
 0x357   : > { %3336 = vst [vmem:[%s5369_s17 + $0x78] sm:$0xff] %v3258_v37 }
 0x35a   : > { %v3149_v38 = vpop.f32.mrb[40].mxu0 }
 0x35b   : > { %3337 = vst [vmem:[%s5369_s17 + $0x80] sm:$0xff] %v3149_v38  ;;  %v3262_v39 = vpop.f32.mrb[40].mxu1  ;;  %v3151_v40 = vpop.f32.mrb[41].mxu0 }
 0x35c   : > { %3339 = vst [vmem:[%s5369_s17 + $0x90] sm:$0xff] %v3262_v39  ;;  %3338 = vst [vmem:[%s5369_s17 + $0x88] sm:$0xff] %v3151_v40  ;;  %v3264_v41 = vpop.f32.mrb[41].mxu1  ;;  %v3153_v42 = vpop.f32.mrb[42].mxu0 }
 0x35d   : > { %3340 = vst [vmem:[%s5369_s17 + $0x98] sm:$0xff] %v3264_v41  ;;  %3341 = vst [vmem:[%s5369_s17 + $0xa0] sm:$0xff] %v3153_v42  ;;  %v3266_v43 = vpop.f32.mrb[42].mxu1  ;;  %v3155_v45 = vpop.f32.mrb[43].mxu0 }
 0x35e   : > { %3343 = vst [vmem:[%s5369_s17 + $0xb0] sm:$0xff] %v3266_v43  ;;  %3342 = vst [vmem:[%s5369_s17 + $0xa8] sm:$0xff] %v3155_v45  ;;  %v3268_v46 = vpop.f32.mrb[43].mxu1 }
 0x35f   : > { %3344 = vst [vmem:[%s5369_s17 + $0xb8] sm:$0xff] %v3268_v46 }
 0x362   : > { %v3159_v47 = vpop.f32.mrb[44].mxu0 }
 0x363   : > { %3345 = vst [vmem:[%s5369_s17 + $0xc0] sm:$0xff] %v3159_v47  ;;  %v3272_v48 = vpop.f32.mrb[44].mxu1  ;;  %v3161_v50 = vpop.f32.mrb[45].mxu0 }
 0x364   : > { %3347 = vst [vmem:[%s5369_s17 + $0xd0] sm:$0xff] %v3272_v48  ;;  %3346 = vst [vmem:[%s5369_s17 + $0xc8] sm:$0xff] %v3161_v50  ;;  %v3274_v51 = vpop.f32.mrb[45].mxu1  ;;  %v3163_v52 = vpop.f32.mrb[46].mxu0 }
 0x365   : > { %3348 = vst [vmem:[%s5369_s17 + $0xd8] sm:$0xff] %v3274_v51  ;;  %3349 = vst [vmem:[%s5369_s17 + $0xe0] sm:$0xff] %v3163_v52  ;;  %v3276_v53 = vpop.f32.mrb[46].mxu1  ;;  %v3165_v54 = vpop.f32.mrb[47].mxu0 }
 0x366   : > { %3351 = vst [vmem:[%s5369_s17 + $0xf0] sm:$0xff] %v3276_v53  ;;  %3350 = vst [vmem:[%s5369_s17 + $0xe8] sm:$0xff] %v3165_v54  ;;  %v3278_v55 = vpop.f32.mrb[47].mxu1 }
 0x367   : > { %3352 = vst [vmem:[%s5369_s17 + $0xf8] sm:$0xff] %v3278_v55 }
 0x36a   : > { %v3169_v57 = vpop.f32.mrb[48].mxu0 }
 0x36b   : > { %3353 = vst [vmem:[%s5369_s17 + $0x100] sm:$0xff] %v3169_v57  ;;  %v3282_v32 = vpop.f32.mrb[48].mxu1  ;;  %v3171_v58 = vpop.f32.mrb[49].mxu0 }
 0x36c   : > { %3355 = vst [vmem:[%s5369_s17 + $0x110] sm:$0xff] %v3282_v32  ;;  %3354 = vst [vmem:[%s5369_s17 + $0x108] sm:$0xff] %v3171_v58  ;;  %v3284_v59 = vpop.f32.mrb[49].mxu1  ;;  %v3173_v61 = vpop.f32.mrb[50].mxu0 }
 0x36d   : > { %3356 = vst [vmem:[%s5369_s17 + $0x118] sm:$0xff] %v3284_v59  ;;  %3357 = vst [vmem:[%s5369_s17 + $0x120] sm:$0xff] %v3173_v61  ;;  %v3286_v62 = vpop.f32.mrb[50].mxu1  ;;  %v3175_v63 = vpop.f32.mrb[51].mxu0 }
 0x36e   : > { %3359 = vst [vmem:[%s5369_s17 + $0x130] sm:$0xff] %v3286_v62  ;;  %3358 = vst [vmem:[%s5369_s17 + $0x128] sm:$0xff] %v3175_v63  ;;  %v3288_v0 = vpop.f32.mrb[51].mxu1 }
 0x36f   : > { %3360 = vst [vmem:[%s5369_s17 + $0x138] sm:$0xff] %v3288_v0 }
 0x372   : > { %v3179_v1 = vpop.f32.mrb[52].mxu0 }
 0x373   : > { %3361 = vst [vmem:[%s5369_s17 + $0x140] sm:$0xff] %v3179_v1  ;;  %v3292_v33 = vpop.f32.mrb[52].mxu1  ;;  %v3181_v2 = vpop.f32.mrb[53].mxu0 }
 0x374   : > { %3363 = vst [vmem:[%s5369_s17 + $0x150] sm:$0xff] %v3292_v33  ;;  %3362 = vst [vmem:[%s5369_s17 + $0x148] sm:$0xff] %v3181_v2  ;;  %v3294_v3 = vpop.f32.mrb[53].mxu1  ;;  %v3183_v34 = vpop.f32.mrb[54].mxu0 }
 0x375   : > { %3364 = vst [vmem:[%s5369_s17 + $0x158] sm:$0xff] %v3294_v3  ;;  %3365 = vst [vmem:[%s5369_s17 + $0x160] sm:$0xff] %v3183_v34  ;;  %v3296_v4 = vpop.f32.mrb[54].mxu1  ;;  %v3185_v6 = vpop.f32.mrb[55].mxu0 }
 0x376   : > { %3367 = vst [vmem:[%s5369_s17 + $0x170] sm:$0xff] %v3296_v4  ;;  %3366 = vst [vmem:[%s5369_s17 + $0x168] sm:$0xff] %v3185_v6  ;;  %v3298_v7 = vpop.f32.mrb[55].mxu1 }
 0x377   : > { %3368 = vst [vmem:[%s5369_s17 + $0x178] sm:$0xff] %v3298_v7 }
 0x37a   : > { %v3189_v11 = vpop.f32.mrb[56].mxu0 }
 0x37b   : > { %3369 = vst [vmem:[%s5369_s17 + $0x180] sm:$0xff] %v3189_v11  ;;  %v3302_v13 = vpop.f32.mrb[56].mxu1  ;;  %v3191_v14 = vpop.f32.mrb[57].mxu0 }
 0x37c   : > { %3371 = vst [vmem:[%s5369_s17 + $0x190] sm:$0xff] %v3302_v13  ;;  %3370 = vst [vmem:[%s5369_s17 + $0x188] sm:$0xff] %v3191_v14  ;;  %v3304_v16 = vpop.f32.mrb[57].mxu1  ;;  %v3193_v18 = vpop.f32.mrb[58].mxu0 }
 0x37d   : > { %3372 = vst [vmem:[%s5369_s17 + $0x198] sm:$0xff] %v3304_v16  ;;  %3373 = vst [vmem:[%s5369_s17 + $0x1a0] sm:$0xff] %v3193_v18  ;;  %v3306_v10 = vpop.f32.mrb[58].mxu1  ;;  %v3195_v19 = vpop.f32.mrb[59].mxu0 }
 0x37e   : > { %3375 = vst [vmem:[%s5369_s17 + $0x1b0] sm:$0xff] %v3306_v10  ;;  %3374 = vst [vmem:[%s5369_s17 + $0x1a8] sm:$0xff] %v3195_v19  ;;  %v3308_v21 = vpop.f32.mrb[59].mxu1 }
 0x37f   : > { %3376 = vst [vmem:[%s5369_s17 + $0x1b8] sm:$0xff] %v3308_v21 }
 0x382   : > { %v3199_v12 = vpop.f32.mrb[60].mxu0 }
 0x383   : > { %3377 = vst [vmem:[%s5369_s17 + $0x1c0] sm:$0xff] %v3199_v12  ;;  %v3312_v22 = vpop.f32.mrb[60].mxu1  ;;  %v3201_v23 = vpop.f32.mrb[61].mxu0 }
 0x384   : > { %3379 = vst [vmem:[%s5369_s17 + $0x1d0] sm:$0xff] %v3312_v22  ;;  %3378 = vst [vmem:[%s5369_s17 + $0x1c8] sm:$0xff] %v3201_v23  ;;  %v3314_v17 = vpop.f32.mrb[61].mxu1  ;;  %v3203_v25 = vpop.f32.mrb[62].mxu0 }
 0x385   : > { %3380 = vst [vmem:[%s5369_s17 + $0x1d8] sm:$0xff] %v3314_v17  ;;  %3381 = vst [vmem:[%s5369_s17 + $0x1e0] sm:$0xff] %v3203_v25  ;;  %v3316_v26 = vpop.f32.mrb[62].mxu1  ;;  %v3205_v8 = vpop.f32.mrb[63].mxu0 }
 0x386   : > { %3383 = vst [vmem:[%s5369_s17 + $0x1f0] sm:$0xff] %v3316_v26  ;;  %3382 = vst [vmem:[%s5369_s17 + $0x1e8] sm:$0xff] %v3205_v8  ;;  %v3318_v15 = vpop.f32.mrb[63].mxu1 }
 0x387   : > { %3384 = vst [vmem:[%s5369_s17 + $0x1f8] sm:$0xff] %v3318_v15 }
 0x388   : > { %4703 = shalt.err (!%p4700_p10)
}
 0x389   : > { %s4704_s26 = scalar_lea.hbm %s5435_s19, 8192  ;;  %s4708_s15 = scalar_lea.hbm %s5565_s8, 16384 }
 0x38a   : > { %p4705_p3 = scmp.ne.s32.totalorder %s5435_s19, %s4704_s26  ;;  %p4709_p9 = scmp.lt.u32.totalorder %s5435_s19, %s5565_s8 }
 0x38b   : > { %p4710_p2 = scmp.lt.u32.totalorder %s4708_s15, %s4704_s26  ;;  %p4712_p6 = scmp.lt.u32.totalorder %s4704_s26, %s5435_s19 }
 0x38c   : > { %p4706_p0 = pnand %p4705_p3, %p5566_p13 }
 0x38d   : > { %p4711_p4 = por %p4710_p2, %p4709_p9 }
 0x38e   : > { %p4707_p5 = pneg %p4706_p0 }
 0x38f   : > { %p4713_p7 = por %p4712_p6, %p4711_p4 }
 0x391   : > { %p4714_p12 = pnand %p4713_p7, %p4707_p5 }
 0x393   : > { %4717 = shalt.err (!%p4714_p12)
}
 0x394   : > { %s4804_s22 = smov 512   ;;  %s4805_s10 = smov 32  }
 0x395   : > { %4005 = dma.vmem_to_hbm [thread:$0]  (%p5566_p13), %s5437_s14, 8192, %s5435_s19, %s3386_s20, %s4804_s22, %s4804_s22, %s4805_s10  }
 0x396 PF: > { %s5567_s18 = sld [smem:[#allocation21_spill]]  ;;  %s5568_s17 = sld [smem:[#allocation25_spill]] }
 0x397   : > { %s5569_s0 = sld [smem:[#allocation24_spill]] }
 0x39c   : > { %s3417_s24 = sand.u32 1, %s5567_s18   ;;  %p5570_p11 = scmp.ne.s32.totalorder %s5568_s17, 0 }
 0x39d   : > { %p5571_p8 = scmp.ge.s32.totalorder %s5569_s0, 2  ;;  %s3418_s23 = scalar_lea.sflag [#allocation6], %s3417_s24 }
 0x39f   : > { %p4028_p1 = pnand %p5571_p8, %p5570_p11 }
 0x3a1   : > { %4763 = dma.done.wait (!%p4028_p1), %s3418_s23, 8192  }
 0x3a2   : > { %4765 = vsyncadd (!%p4028_p1), %s3418_s23, 4294959104  ;;  %s26_s10 = sadd.s32 1, %s5569_s0   ;;  %s5572_s25 = sld [smem:[#allocation22_spill]] }
 0x3a3   : > { %p23_p10 = scmp.ge.s32.totalorder %s26_s10, 4   ;;  %s5573_s29 = sld [smem:[#allocation28_spill]] }
 0x3a4   : > { %s5574_s1 = sld [smem:[#allocation26_spill]]  ;;  %s5575_s27 = smov %s4772_s28 }
 0x3a5   : > { %s5577_s30 = smov %s4784_s9  ;;  %25 = sbr.rel (!%p23_p10) target bundleno = 13 (0xd), region = 130 }
 0x3a8   : > { %s5576_s28 = smov %s5572_s25 }
 0x3aa   : > { %s5578_s9 = smov %s5574_s1 }
 0x3ac   :  { %3423 = vsyncpa [#allocation5], 1 }
 0x3ad   :  { %3425 = vsyncpa [#allocation5 + $0x1], 1 }
 0x3ae   :  { %3426 = vsyncpa [#allocation8], 1 }
 0x3af   :  { %3427 = vsyncpa [#allocation12], 1 }
 0x3b0   :  { %3428 = vsyncpa [#allocation6], 1 }
 0x3b1   :  { %3430 = vsyncpa [#allocation6 + $0x1], 1 }

</bundles_post_ra>
